<compile_context>
chip_gen: v7x
topology: tpu7x:2x2x1
jax: 0.10.0
libtpu: 0.0.40
codegen_flags: <defaults>
</compile_context>

<pallas_src>
from functools import partial

import numpy as np
import jax
import jax.numpy as jnp
from jax.experimental import pallas as pl
from jax.experimental.pallas import tpu as pltpu


# ------------------------------ fused kernel --------------------------------
#
# Per grid step (Bt batch elements), row index inside every slab is q*Bt + b:
#   input  : (7*Bt, 256)  lanes = d*128 + t*32 + u   -> input row 4*(q+d)+t, col u
#   conv1  : per phase r=2p+rr, (7*Bt, 256) lanes = dx*128 + c*14 + j (out col 2j+dx)
#   h1     : (7*Bt, 256)  lanes = p*128 + c*14 + jcol (pooled1 row 2q+p), VMEM scratch
#   conv2  : (5*Bt, 512)  lanes = rr*256 + dj*128 + j2*16 + o (out row 2i+rr, col 2j2+dj)
#   p2     : (5*Bt, 128)  lanes = j2*16 + o (pooled2 row i)
#   fc1..3 : (Bt, 120/84/128)

def _lenet_kernel(x_ref, w1_ref, b1_ref, w2_ref, b2_ref,
                  fw1_ref, fb1_ref, fw2_ref, fb2_ref, fw3_ref, fb3_ref,
                  o_ref, h1_ref, *, bt):
    f32, bf16 = jnp.float32, jnp.bfloat16
    lhs1 = x_ref[0]                                        # (7*bt, 256) bf16
    b1 = b1_ref[...]                                       # (1, 256) f32

    # ---- conv1 (K=256) + bias + fused 2x2 max-pool + ReLU -> h1 scratch ----
    for p in range(2):
        d0 = jnp.dot(lhs1, w1_ref[2 * p], preferred_element_type=f32)
        d1 = jnp.dot(lhs1, w1_ref[2 * p + 1], preferred_element_type=f32)
        m = jnp.maximum(d0, d1) + b1                       # max over row pair, + bias
        m = jnp.maximum(m[:, 0:128], m[:, 128:256])        # max over column pair
        h1_ref[:, p * 128:(p + 1) * 128] = jnp.maximum(m, 0.0)

    # ---- conv2: 3 dots (one per pooled-row offset e), K=256, N=512 ----
    b2 = b2_ref[...]                                       # (1, 512) f32
    c2 = None
    for e in range(3):
        lhs2 = h1_ref[e * bt:e * bt + 5 * bt, :].astype(bf16)      # (5*bt, 256)
        t = jnp.dot(lhs2, w2_ref[e], preferred_element_type=f32)
        c2 = t if c2 is None else c2 + t
    c2 = c2 + b2                                           # (5*bt, 512)
    m2 = jnp.maximum(jnp.maximum(c2[:, 0:128], c2[:, 128:256]),
                     jnp.maximum(c2[:, 256:384], c2[:, 384:512]))
    p2 = jnp.maximum(m2, 0.0)                              # (5*bt, 128)

    # ---- fc1 (+ReLU): 5 accumulated (bt,128)@(128,120) dots on contiguous slabs ----
    y = None
    for i in range(5):
        lhs3 = p2[i * bt:(i + 1) * bt, :].astype(bf16)
        t = jnp.dot(lhs3, fw1_ref[i], preferred_element_type=f32)
        y = t if y is None else y + t
    y = jnp.maximum(y + fb1_ref[...], 0.0)                 # (bt, 120)

    # ---- fc2 (+ReLU), fc3 (lane-padded to 128) ----
    y = jnp.maximum(jnp.dot(y.astype(bf16), fw2_ref[...],
                            preferred_element_type=f32) + fb2_ref[...], 0.0)
    out = jnp.dot(y.astype(bf16), fw3_ref[...],
                  preferred_element_type=f32) + fb3_ref[...]
    o_ref[...] = out                                       # (bt, 128), lanes 10.. are 0


# ------------------------ host-side weight preparation ----------------------
# Tiny, done once per call in XLA; absorbs all conv/pool/flatten layout logic.

def _conv1_matrices(w1, b1):
    """Conv1 as 4 (256,256) matrices, one per conv-output row phase r = 2p+rr."""
    w1s = w1[:, 0]                                         # (6, 5, 5)
    r = np.arange(4)[:, None, None]
    il = np.arange(256)[None, :, None]
    ol = np.arange(256)[None, None, :]
    d, ri = il // 128, il % 128
    t, u = ri // 32, ri % 32
    dx, cl = ol // 128, ol % 128
    c, j = cl // 14, cl % 14
    kh = 4 * d + t - r
    kw = u - (2 * j + dx)
    valid = (cl < 84) & (kh >= 0) & (kh < 5) & (kw >= 0) & (kw < 5)
    vals = w1s[np.clip(c, 0, 5), np.clip(kh, 0, 4), np.clip(kw, 0, 4)]
    w1m = jnp.where(valid, vals, 0.0).astype(jnp.bfloat16)             # (4, 256, 256)
    clb = np.arange(256) % 128
    b1r = jnp.where(clb < 84, b1[np.clip(clb // 14, 0, 5)], 0.0)[None, :]
    return w1m, b1r.astype(jnp.float32)


def _conv2_matrices(w2, b2):
    """Conv2 as 3 (256,512) matrices, one per pooled-row offset e (K packs both h1
    phases; N packs both output row phases rr and both column phases dj)."""
    e = np.arange(3)[:, None, None]
    il = np.arange(256)[None, :, None]
    ol = np.arange(512)[None, None, :]
    p, ci = il // 128, il % 128
    c, jc = ci // 14, ci % 14
    rr = ol // 256
    dj = (ol // 128) % 2
    rem = ol % 128
    j2, o = rem // 16, rem % 16
    kh = 2 * e + p - rr
    kw = jc - (2 * j2 + dj)
    valid = (ci < 84) & (rem < 80) & (kh >= 0) & (kh < 5) & (kw >= 0) & (kw < 5)
    vals = w2[o, np.clip(c, 0, 5), np.clip(kh, 0, 4), np.clip(kw, 0, 4)]
    w2m = jnp.where(valid, vals, 0.0).astype(jnp.bfloat16)             # (3, 256, 512)
    remb = np.arange(512) % 128
    b2r = jnp.where(remb < 80, b2[remb % 16], 0.0)[None, :]
    return w2m, b2r.astype(jnp.float32)


def _fc1_matrix(fw1):
    """fc1 rows (PyTorch flatten o*25+i*5+j2) permuted to 5 (128,120) blocks, one per
    pooled row i; input lanes = j2*16 + o, lanes >= 80 zeroed."""
    i = np.arange(5)[:, None]
    lane = np.arange(128)[None, :]
    j2, o = np.clip(lane // 16, 0, 4), lane % 16
    idx = o * 25 + i * 5 + j2                                          # (5, 128), <= 399
    w = jnp.where((lane < 80)[..., None], fw1[idx], 0.0)
    return w.astype(jnp.bfloat16)                                      # (5, 128, 120)


# ------------------------------- forward pass -------------------------------

def lenet_forward(x, p, bt=8):
    assert bt % 8 == 0
    B = x.shape[0]
    Bp = ((B + bt - 1) // bt) * bt
    if Bp != B:
        x = jnp.concatenate([x, jnp.zeros((Bp - B,) + x.shape[1:], x.dtype)], axis=0)
    G = Bp // bt

    # Input layout: lanes = t*32 + col (row phase t = row mod 4), shifted row pair
    # packed along lanes (d*128), q-major rows inside each batch tile.
    xs = x[:, 0]                                                   # (Bp, 32, 32)
    X = xs.reshape(Bp, 8, 128)                                     # [b, u, t*32+col]
    X2 = jnp.concatenate([X[:, 0:7, :], X[:, 1:8, :]], axis=-1)    # (Bp, 7, 256)
    X2 = X2.reshape(G, bt, 7, 256).transpose(0, 2, 1, 3).reshape(G, 7 * bt, 256)
    X2 = X2.astype(jnp.bfloat16)

    w1m, b1r = _conv1_matrices(p['w1'], p['b1'])
    w2m, b2r = _conv2_matrices(p['w2'], p['b2'])
    fw1p = _fc1_matrix(p['fw1'])
    fb1 = p['fb1'][None, :].astype(jnp.float32)
    fw2 = p['fw2'].astype(jnp.bfloat16)
    fb2 = p['fb2'][None, :].astype(jnp.float32)
    fw3p = jnp.pad(p['fw3'], ((0, 0), (0, 118))).astype(jnp.bfloat16)   # (84, 128)
    fb3p = jnp.pad(p['fb3'], (0, 118))[None, :].astype(jnp.float32)     # (1, 128)

    def full(a):
        n = a.ndim
        return pl.BlockSpec(a.shape, lambda g, n=n: (0,) * n)

    out = pl.pallas_call(
        partial(_lenet_kernel, bt=bt),
        out_shape=jax.ShapeDtypeStruct((Bp, 128), jnp.float32),
        grid=(G,),
        in_specs=[
            pl.BlockSpec((1, 7 * bt, 256), lambda g: (g, 0, 0)),
            full(w1m), full(b1r), full(w2m), full(b2r),
            full(fw1p), full(fb1), full(fw2), full(fb2), full(fw3p), full(fb3p),
        ],
        out_specs=pl.BlockSpec((bt, 128), lambda g: (g, 0)),
        scratch_shapes=[pltpu.VMEM((7 * bt, 256), jnp.float32)],
        compiler_params=pltpu.CompilerParams(
            dimension_semantics=("parallel",)),
    )(X2, w1m, b1r, w2m, b2r, fw1p, fb1, fw2, fb2, fw3p, fb3p)
    return out[:B, :10]


# --------------------------- pure-JAX reference ------------------------------

def lenet_ref(x, p):
    dn = ('NCHW', 'OIHW', 'NCHW')
    y = jax.lax.conv_general_dilated(x, p['w1'], (1, 1), 'VALID', dimension_numbers=dn)
    y = jax.nn.relu(y + p['b1'][None, :, None, None])
    y = jax.lax.reduce_window(y, -jnp.inf, jax.lax.max, (1, 1, 2, 2), (1, 1, 2, 2), 'VALID')
    y = jax.lax.conv_general_dilated(y, p['w2'], (1, 1), 'VALID', dimension_numbers=dn)
    y = jax.nn.relu(y + p['b2'][None, :, None, None])
    y = jax.lax.reduce_window(y, -jnp.inf, jax.lax.max, (1, 1, 2, 2), (1, 1, 2, 2), 'VALID')
    y = y.reshape(y.shape[0], -1)
    y = jax.nn.relu(y @ p['fw1'] + p['fb1'])
    y = jax.nn.relu(y @ p['fw2'] + p['fb2'])
    return y @ p['fw3'] + p['fb3']


# --------------------------------- params ------------------------------------

def init_params(key):
    def uni(k, shape, fan_in):
        bound = 1.0 / jnp.sqrt(float(fan_in))
        return jax.random.uniform(k, shape, jnp.float32, -bound, bound)

    ks = jax.random.split(key, 10)
    return {
        'w1': uni(ks[0], (6, 1, 5, 5), 1 * 5 * 5),
        'b1': uni(ks[1], (6,), 1 * 5 * 5),
        'w2': uni(ks[2], (16, 6, 5, 5), 6 * 5 * 5),
        'b2': uni(ks[3], (16,), 6 * 5 * 5),
        # fc weights stored as (in, out); rows follow PyTorch's (C,H,W) flatten.
        'fw1': uni(ks[4], (400, 120), 400),
        'fb1': uni(ks[5], (120,), 400),
        'fw2': uni(ks[6], (120, 84), 120),
        'fb2': uni(ks[7], (84,), 120),
        'fw3': uni(ks[8], (84, 10), 84),
        'fb3': uni(ks[9], (10,), 84),
    }


if __name__ == "__main__":
    key = jax.random.PRNGKey(0)
    k_param, k_x = jax.random.split(key)
    params = init_params(k_param)
    # LeNet needs a 32x32 single-channel input; B=16 gives 2 parallel grid steps.
    B = 16
    x = jax.random.normal(k_x, (B, 1, 32, 32), jnp.float32)

    out = jax.block_until_ready(jax.jit(lenet_forward)(x, params))
    ref = jax.block_until_ready(lenet_ref(x, params))

    assert out.shape == (B, 10), out.shape
    err = jnp.max(jnp.abs(out - ref))
    assert jnp.allclose(out, ref, rtol=2e-2, atol=2e-2), f"max abs diff {err}"
    print("KERNEL_OK")
</pallas_src>

<mosaic_0001>
module attributes {stable_mosaic.version = 11 : i64} {
  func.func @_lenet_kernel(%arg0: i32, %arg1: memref<1x56x256xbf16, #tpu.memory_space<vmem>>, %arg2: memref<4x256x256xbf16, #tpu.memory_space<vmem>>, %arg3: memref<1x256xf32, #tpu.memory_space<vmem>>, %arg4: memref<3x256x512xbf16, #tpu.memory_space<vmem>>, %arg5: memref<1x512xf32, #tpu.memory_space<vmem>>, %arg6: memref<5x128x120xbf16, #tpu.memory_space<vmem>>, %arg7: memref<1x120xf32, #tpu.memory_space<vmem>>, %arg8: memref<120x84xbf16, #tpu.memory_space<vmem>>, %arg9: memref<1x84xf32, #tpu.memory_space<vmem>>, %arg10: memref<84x128xbf16, #tpu.memory_space<vmem>>, %arg11: memref<1x128xf32, #tpu.memory_space<vmem>>, %arg12: memref<8x128xf32, #tpu.memory_space<vmem>>, %arg13: memref<56x256xf32, #tpu.memory_space<vmem>>) attributes {dimension_semantics = [#tpu.dimension_semantics<parallel>], iteration_bounds = array<i64: 2>, scalar_prefetch = 0 : i64, scratch_operands = 1 : i64, tpu.core_type = #tpu.core_type<tc>, window_params = [{transform_indices = @transform_0, window_bounds = array<i64: 1, 56, 256>}, {pipeline_mode = #tpu.pipeline_mode<synchronous>, transform_indices = @transform_1, window_bounds = array<i64: 4, 256, 256>}, {pipeline_mode = #tpu.pipeline_mode<synchronous>, transform_indices = @transform_2, window_bounds = array<i64: 1, 256>}, {pipeline_mode = #tpu.pipeline_mode<synchronous>, transform_indices = @transform_3, window_bounds = array<i64: 3, 256, 512>}, {pipeline_mode = #tpu.pipeline_mode<synchronous>, transform_indices = @transform_4, window_bounds = array<i64: 1, 512>}, {pipeline_mode = #tpu.pipeline_mode<synchronous>, transform_indices = @transform_5, window_bounds = array<i64: 5, 128, 120>}, {pipeline_mode = #tpu.pipeline_mode<synchronous>, transform_indices = @transform_6, window_bounds = array<i64: 1, 120>}, {pipeline_mode = #tpu.pipeline_mode<synchronous>, transform_indices = @transform_7, window_bounds = array<i64: 120, 84>}, {pipeline_mode = #tpu.pipeline_mode<synchronous>, transform_indices = @transform_8, window_bounds = array<i64: 1, 84>}, {pipeline_mode = #tpu.pipeline_mode<synchronous>, transform_indices = @transform_9, window_bounds = array<i64: 84, 128>}, {pipeline_mode = #tpu.pipeline_mode<synchronous>, transform_indices = @transform_10, window_bounds = array<i64: 1, 128>}, {transform_indices = @transform_11, window_bounds = array<i64: 8, 128>}]} {
    %c0 = arith.constant 0 : index
    %c0_0 = arith.constant 0 : index
    %c0_1 = arith.constant 0 : index
    %0 = vector.load %arg1[%c0, %c0_0, %c0_1] : memref<1x56x256xbf16, #tpu.memory_space<vmem>>, vector<1x56x256xbf16>
    %1 = vector.shape_cast %0 : vector<1x56x256xbf16> to vector<56x256xbf16>
    %c0_2 = arith.constant 0 : index
    %c0_3 = arith.constant 0 : index
    %2 = vector.load %arg3[%c0_2, %c0_3] : memref<1x256xf32, #tpu.memory_space<vmem>>, vector<1x256xf32>
    %c0_4 = arith.constant 0 : index
    %c0_5 = arith.constant 0 : index
    %c0_6 = arith.constant 0 : index
    %3 = vector.load %arg2[%c0_4, %c0_5, %c0_6] : memref<4x256x256xbf16, #tpu.memory_space<vmem>>, vector<1x256x256xbf16>
    %4 = vector.shape_cast %3 : vector<1x256x256xbf16> to vector<256x256xbf16>
    %cst = arith.constant dense<0.000000e+00> : vector<56x256xf32>
    %5 = tpu.matmul %1, %4, %cst {dimension_numbers = #tpu.dot_dimension_numbers<[1], [0], [0], [1], [0, 0, 1, 1], [], []>} : vector<56x256xbf16>, vector<256x256xbf16>, vector<56x256xf32> -> vector<56x256xf32>
    %c1 = arith.constant 1 : index
    %c0_7 = arith.constant 0 : index
    %c0_8 = arith.constant 0 : index
    %6 = vector.load %arg2[%c1, %c0_7, %c0_8] : memref<4x256x256xbf16, #tpu.memory_space<vmem>>, vector<1x256x256xbf16>
    %7 = vector.shape_cast %6 : vector<1x256x256xbf16> to vector<256x256xbf16>
    %cst_9 = arith.constant dense<0.000000e+00> : vector<56x256xf32>
    %8 = tpu.matmul %1, %7, %cst_9 {dimension_numbers = #tpu.dot_dimension_numbers<[1], [0], [0], [1], [0, 0, 1, 1], [], []>} : vector<56x256xbf16>, vector<256x256xbf16>, vector<56x256xf32> -> vector<56x256xf32>
    %9 = arith.maximumf %5, %8 : vector<56x256xf32>
    %10 = vector.broadcast %2 : vector<1x256xf32> to vector<56x256xf32>
    %11 = arith.addf %9, %10 : vector<56x256xf32>
    %12 = vector.extract_strided_slice %11 {offsets = [0, 0], sizes = [56, 128], strides = [1, 1]} : vector<56x256xf32> to vector<56x128xf32>
    %13 = vector.extract_strided_slice %11 {offsets = [0, 128], sizes = [56, 128], strides = [1, 1]} : vector<56x256xf32> to vector<56x128xf32>
    %14 = arith.maximumf %12, %13 : vector<56x128xf32>
    %cst_10 = arith.constant 0.000000e+00 : f32
    %15 = vector.broadcast %cst_10 : f32 to vector<56x128xf32>
    %16 = arith.maximumf %14, %15 : vector<56x128xf32>
    %c0_11 = arith.constant 0 : index
    %c0_12 = arith.constant 0 : index
    %17 = vector.load %arg13[%c0_11, %c0_12] : memref<56x256xf32, #tpu.memory_space<vmem>>, vector<56x128xf32>
    tpu.vector_store %arg13[%c0_11, %c0_12], %16 {strides = array<i32>} : memref<56x256xf32, #tpu.memory_space<vmem>>, vector<56x128xf32>,
    %c2 = arith.constant 2 : index
    %c0_13 = arith.constant 0 : index
    %c0_14 = arith.constant 0 : index
    %18 = vector.load %arg2[%c2, %c0_13, %c0_14] : memref<4x256x256xbf16, #tpu.memory_space<vmem>>, vector<1x256x256xbf16>
    %19 = vector.shape_cast %18 : vector<1x256x256xbf16> to vector<256x256xbf16>
    %cst_15 = arith.constant dense<0.000000e+00> : vector<56x256xf32>
    %20 = tpu.matmul %1, %19, %cst_15 {dimension_numbers = #tpu.dot_dimension_numbers<[1], [0], [0], [1], [0, 0, 1, 1], [], []>} : vector<56x256xbf16>, vector<256x256xbf16>, vector<56x256xf32> -> vector<56x256xf32>
    %c3 = arith.constant 3 : index
    %c0_16 = arith.constant 0 : index
    %c0_17 = arith.constant 0 : index
    %21 = vector.load %arg2[%c3, %c0_16, %c0_17] : memref<4x256x256xbf16, #tpu.memory_space<vmem>>, vector<1x256x256xbf16>
    %22 = vector.shape_cast %21 : vector<1x256x256xbf16> to vector<256x256xbf16>
    %cst_18 = arith.constant dense<0.000000e+00> : vector<56x256xf32>
    %23 = tpu.matmul %1, %22, %cst_18 {dimension_numbers = #tpu.dot_dimension_numbers<[1], [0], [0], [1], [0, 0, 1, 1], [], []>} : vector<56x256xbf16>, vector<256x256xbf16>, vector<56x256xf32> -> vector<56x256xf32>
    %24 = arith.maximumf %20, %23 : vector<56x256xf32>
    %25 = vector.broadcast %2 : vector<1x256xf32> to vector<56x256xf32>
    %26 = arith.addf %24, %25 : vector<56x256xf32>
    %27 = vector.extract_strided_slice %26 {offsets = [0, 0], sizes = [56, 128], strides = [1, 1]} : vector<56x256xf32> to vector<56x128xf32>
    %28 = vector.extract_strided_slice %26 {offsets = [0, 128], sizes = [56, 128], strides = [1, 1]} : vector<56x256xf32> to vector<56x128xf32>
    %29 = arith.maximumf %27, %28 : vector<56x128xf32>
    %cst_19 = arith.constant 0.000000e+00 : f32
    %30 = vector.broadcast %cst_19 : f32 to vector<56x128xf32>
    %31 = arith.maximumf %29, %30 : vector<56x128xf32>
    %c0_20 = arith.constant 0 : index
    %c128 = arith.constant 128 : index
    %32 = vector.load %arg13[%c0_20, %c128] : memref<56x256xf32, #tpu.memory_space<vmem>>, vector<56x128xf32>
    tpu.vector_store %arg13[%c0_20, %c128], %31 {strides = array<i32>} : memref<56x256xf32, #tpu.memory_space<vmem>>, vector<56x128xf32>,
    %c0_21 = arith.constant 0 : index
    %c0_22 = arith.constant 0 : index
    %33 = vector.load %arg5[%c0_21, %c0_22] : memref<1x512xf32, #tpu.memory_space<vmem>>, vector<1x512xf32>
    %c0_23 = arith.constant 0 : index
    %c0_24 = arith.constant 0 : index
    %34 = vector.load %arg13[%c0_23, %c0_24] : memref<56x256xf32, #tpu.memory_space<vmem>>, vector<40x256xf32>
    %35 = arith.truncf %34 : vector<40x256xf32> to vector<40x256xbf16>
    %c0_25 = arith.constant 0 : index
    %c0_26 = arith.constant 0 : index
    %c0_27 = arith.constant 0 : index
    %36 = vector.load %arg4[%c0_25, %c0_26, %c0_27] : memref<3x256x512xbf16, #tpu.memory_space<vmem>>, vector<1x256x512xbf16>
    %37 = vector.shape_cast %36 : vector<1x256x512xbf16> to vector<256x512xbf16>
    %cst_28 = arith.constant dense<0.000000e+00> : vector<40x512xf32>
    %38 = tpu.matmul %35, %37, %cst_28 {dimension_numbers = #tpu.dot_dimension_numbers<[1], [0], [0], [1], [0, 0, 1, 1], [], []>} : vector<40x256xbf16>, vector<256x512xbf16>, vector<40x512xf32> -> vector<40x512xf32>
    %c8 = arith.constant 8 : index
    %c0_29 = arith.constant 0 : index
    %39 = vector.load %arg13[%c8, %c0_29] : memref<56x256xf32, #tpu.memory_space<vmem>>, vector<40x256xf32>
    %40 = arith.truncf %39 : vector<40x256xf32> to vector<40x256xbf16>
    %c1_30 = arith.constant 1 : index
    %c0_31 = arith.constant 0 : index
    %c0_32 = arith.constant 0 : index
    %41 = vector.load %arg4[%c1_30, %c0_31, %c0_32] : memref<3x256x512xbf16, #tpu.memory_space<vmem>>, vector<1x256x512xbf16>
    %42 = vector.shape_cast %41 : vector<1x256x512xbf16> to vector<256x512xbf16>
    %cst_33 = arith.constant dense<0.000000e+00> : vector<40x512xf32>
    %43 = tpu.matmul %40, %42, %cst_33 {dimension_numbers = #tpu.dot_dimension_numbers<[1], [0], [0], [1], [0, 0, 1, 1], [], []>} : vector<40x256xbf16>, vector<256x512xbf16>, vector<40x512xf32> -> vector<40x512xf32>
    %44 = arith.addf %38, %43 : vector<40x512xf32>
    %c16 = arith.constant 16 : index
    %c0_34 = arith.constant 0 : index
    %45 = vector.load %arg13[%c16, %c0_34] : memref<56x256xf32, #tpu.memory_space<vmem>>, vector<40x256xf32>
    %46 = arith.truncf %45 : vector<40x256xf32> to vector<40x256xbf16>
    %c2_35 = arith.constant 2 : index
    %c0_36 = arith.constant 0 : index
    %c0_37 = arith.constant 0 : index
    %47 = vector.load %arg4[%c2_35, %c0_36, %c0_37] : memref<3x256x512xbf16, #tpu.memory_space<vmem>>, vector<1x256x512xbf16>
    %48 = vector.shape_cast %47 : vector<1x256x512xbf16> to vector<256x512xbf16>
    %cst_38 = arith.constant dense<0.000000e+00> : vector<40x512xf32>
    %49 = tpu.matmul %46, %48, %cst_38 {dimension_numbers = #tpu.dot_dimension_numbers<[1], [0], [0], [1], [0, 0, 1, 1], [], []>} : vector<40x256xbf16>, vector<256x512xbf16>, vector<40x512xf32> -> vector<40x512xf32>
    %50 = arith.addf %44, %49 : vector<40x512xf32>
    %51 = vector.broadcast %33 : vector<1x512xf32> to vector<40x512xf32>
    %52 = arith.addf %50, %51 : vector<40x512xf32>
    %53 = vector.extract_strided_slice %52 {offsets = [0, 0], sizes = [40, 128], strides = [1, 1]} : vector<40x512xf32> to vector<40x128xf32>
    %54 = vector.extract_strided_slice %52 {offsets = [0, 128], sizes = [40, 128], strides = [1, 1]} : vector<40x512xf32> to vector<40x128xf32>
    %55 = arith.maximumf %53, %54 : vector<40x128xf32>
    %56 = vector.extract_strided_slice %52 {offsets = [0, 256], sizes = [40, 128], strides = [1, 1]} : vector<40x512xf32> to vector<40x128xf32>
    %57 = vector.extract_strided_slice %52 {offsets = [0, 384], sizes = [40, 128], strides = [1, 1]} : vector<40x512xf32> to vector<40x128xf32>
    %58 = arith.maximumf %56, %57 : vector<40x128xf32>
    %59 = arith.maximumf %55, %58 : vector<40x128xf32>
    %cst_39 = arith.constant 0.000000e+00 : f32
    %60 = vector.broadcast %cst_39 : f32 to vector<40x128xf32>
    %61 = arith.maximumf %59, %60 : vector<40x128xf32>
    %62 = vector.extract_strided_slice %61 {offsets = [0, 0], sizes = [8, 128], strides = [1, 1]} : vector<40x128xf32> to vector<8x128xf32>
    %63 = arith.truncf %62 : vector<8x128xf32> to vector<8x128xbf16>
    %c0_40 = arith.constant 0 : index
    %c0_41 = arith.constant 0 : index
    %c0_42 = arith.constant 0 : index
    %64 = vector.load %arg6[%c0_40, %c0_41, %c0_42] : memref<5x128x120xbf16, #tpu.memory_space<vmem>>, vector<1x128x120xbf16>
    %65 = vector.shape_cast %64 : vector<1x128x120xbf16> to vector<128x120xbf16>
    %cst_43 = arith.constant dense<0.000000e+00> : vector<8x120xf32>
    %66 = tpu.matmul %63, %65, %cst_43 {dimension_numbers = #tpu.dot_dimension_numbers<[1], [0], [0], [1], [0, 0, 1, 1], [], []>} : vector<8x128xbf16>, vector<128x120xbf16>, vector<8x120xf32> -> vector<8x120xf32>
    %67 = vector.extract_strided_slice %61 {offsets = [8, 0], sizes = [8, 128], strides = [1, 1]} : vector<40x128xf32> to vector<8x128xf32>
    %68 = arith.truncf %67 : vector<8x128xf32> to vector<8x128xbf16>
    %c1_44 = arith.constant 1 : index
    %c0_45 = arith.constant 0 : index
    %c0_46 = arith.constant 0 : index
    %69 = vector.load %arg6[%c1_44, %c0_45, %c0_46] : memref<5x128x120xbf16, #tpu.memory_space<vmem>>, vector<1x128x120xbf16>
    %70 = vector.shape_cast %69 : vector<1x128x120xbf16> to vector<128x120xbf16>
    %cst_47 = arith.constant dense<0.000000e+00> : vector<8x120xf32>
    %71 = tpu.matmul %68, %70, %cst_47 {dimension_numbers = #tpu.dot_dimension_numbers<[1], [0], [0], [1], [0, 0, 1, 1], [], []>} : vector<8x128xbf16>, vector<128x120xbf16>, vector<8x120xf32> -> vector<8x120xf32>
    %72 = arith.addf %66, %71 : vector<8x120xf32>
    %73 = vector.extract_strided_slice %61 {offsets = [16, 0], sizes = [8, 128], strides = [1, 1]} : vector<40x128xf32> to vector<8x128xf32>
    %74 = arith.truncf %73 : vector<8x128xf32> to vector<8x128xbf16>
    %c2_48 = arith.constant 2 : index
    %c0_49 = arith.constant 0 : index
    %c0_50 = arith.constant 0 : index
    %75 = vector.load %arg6[%c2_48, %c0_49, %c0_50] : memref<5x128x120xbf16, #tpu.memory_space<vmem>>, vector<1x128x120xbf16>
    %76 = vector.shape_cast %75 : vector<1x128x120xbf16> to vector<128x120xbf16>
    %cst_51 = arith.constant dense<0.000000e+00> : vector<8x120xf32>
    %77 = tpu.matmul %74, %76, %cst_51 {dimension_numbers = #tpu.dot_dimension_numbers<[1], [0], [0], [1], [0, 0, 1, 1], [], []>} : vector<8x128xbf16>, vector<128x120xbf16>, vector<8x120xf32> -> vector<8x120xf32>
    %78 = arith.addf %72, %77 : vector<8x120xf32>
    %79 = vector.extract_strided_slice %61 {offsets = [24, 0], sizes = [8, 128], strides = [1, 1]} : vector<40x128xf32> to vector<8x128xf32>
    %80 = arith.truncf %79 : vector<8x128xf32> to vector<8x128xbf16>
    %c3_52 = arith.constant 3 : index
    %c0_53 = arith.constant 0 : index
    %c0_54 = arith.constant 0 : index
    %81 = vector.load %arg6[%c3_52, %c0_53, %c0_54] : memref<5x128x120xbf16, #tpu.memory_space<vmem>>, vector<1x128x120xbf16>
    %82 = vector.shape_cast %81 : vector<1x128x120xbf16> to vector<128x120xbf16>
    %cst_55 = arith.constant dense<0.000000e+00> : vector<8x120xf32>
    %83 = tpu.matmul %80, %82, %cst_55 {dimension_numbers = #tpu.dot_dimension_numbers<[1], [0], [0], [1], [0, 0, 1, 1], [], []>} : vector<8x128xbf16>, vector<128x120xbf16>, vector<8x120xf32> -> vector<8x120xf32>
    %84 = arith.addf %78, %83 : vector<8x120xf32>
    %85 = vector.extract_strided_slice %61 {offsets = [32, 0], sizes = [8, 128], strides = [1, 1]} : vector<40x128xf32> to vector<8x128xf32>
    %86 = arith.truncf %85 : vector<8x128xf32> to vector<8x128xbf16>
    %c4 = arith.constant 4 : index
    %c0_56 = arith.constant 0 : index
    %c0_57 = arith.constant 0 : index
    %87 = vector.load %arg6[%c4, %c0_56, %c0_57] : memref<5x128x120xbf16, #tpu.memory_space<vmem>>, vector<1x128x120xbf16>
    %88 = vector.shape_cast %87 : vector<1x128x120xbf16> to vector<128x120xbf16>
    %cst_58 = arith.constant dense<0.000000e+00> : vector<8x120xf32>
    %89 = tpu.matmul %86, %88, %cst_58 {dimension_numbers = #tpu.dot_dimension_numbers<[1], [0], [0], [1], [0, 0, 1, 1], [], []>} : vector<8x128xbf16>, vector<128x120xbf16>, vector<8x120xf32> -> vector<8x120xf32>
    %90 = arith.addf %84, %89 : vector<8x120xf32>
    %c0_59 = arith.constant 0 : index
    %c0_60 = arith.constant 0 : index
    %91 = vector.load %arg7[%c0_59, %c0_60] : memref<1x120xf32, #tpu.memory_space<vmem>>, vector<1x120xf32>
    %92 = vector.broadcast %91 : vector<1x120xf32> to vector<8x120xf32>
    %93 = arith.addf %90, %92 : vector<8x120xf32>
    %cst_61 = arith.constant 0.000000e+00 : f32
    %94 = vector.broadcast %cst_61 : f32 to vector<8x120xf32>
    %95 = arith.maximumf %93, %94 : vector<8x120xf32>
    %96 = arith.truncf %95 : vector<8x120xf32> to vector<8x120xbf16>
    %c0_62 = arith.constant 0 : index
    %c0_63 = arith.constant 0 : index
    %97 = vector.load %arg8[%c0_62, %c0_63] : memref<120x84xbf16, #tpu.memory_space<vmem>>, vector<120x84xbf16>
    %cst_64 = arith.constant dense<0.000000e+00> : vector<8x84xf32>
    %98 = tpu.matmul %96, %97, %cst_64 {dimension_numbers = #tpu.dot_dimension_numbers<[1], [0], [0], [1], [0, 0, 1, 1], [], []>} : vector<8x120xbf16>, vector<120x84xbf16>, vector<8x84xf32> -> vector<8x84xf32>
    %c0_65 = arith.constant 0 : index
    %c0_66 = arith.constant 0 : index
    %99 = vector.load %arg9[%c0_65, %c0_66] : memref<1x84xf32, #tpu.memory_space<vmem>>, vector<1x84xf32>
    %100 = vector.broadcast %99 : vector<1x84xf32> to vector<8x84xf32>
    %101 = arith.addf %98, %100 : vector<8x84xf32>
    %cst_67 = arith.constant 0.000000e+00 : f32
    %102 = vector.broadcast %cst_67 : f32 to vector<8x84xf32>
    %103 = arith.maximumf %101, %102 : vector<8x84xf32>
    %104 = arith.truncf %103 : vector<8x84xf32> to vector<8x84xbf16>
    %c0_68 = arith.constant 0 : index
    %c0_69 = arith.constant 0 : index
    %105 = vector.load %arg10[%c0_68, %c0_69] : memref<84x128xbf16, #tpu.memory_space<vmem>>, vector<84x128xbf16>
    %cst_70 = arith.constant dense<0.000000e+00> : vector<8x128xf32>
    %106 = tpu.matmul %104, %105, %cst_70 {dimension_numbers = #tpu.dot_dimension_numbers<[1], [0], [0], [1], [0, 0, 1, 1], [], []>} : vector<8x84xbf16>, vector<84x128xbf16>, vector<8x128xf32> -> vector<8x128xf32>
    %c0_71 = arith.constant 0 : index
    %c0_72 = arith.constant 0 : index
    %107 = vector.load %arg11[%c0_71, %c0_72] : memref<1x128xf32, #tpu.memory_space<vmem>>, vector<1x128xf32>
    %108 = vector.broadcast %107 : vector<1x128xf32> to vector<8x128xf32>
    %109 = arith.addf %106, %108 : vector<8x128xf32>
    %c0_73 = arith.constant 0 : index
    %c0_74 = arith.constant 0 : index
    %110 = vector.load %arg12[%c0_73, %c0_74] : memref<8x128xf32, #tpu.memory_space<vmem>>, vector<8x128xf32>
    tpu.vector_store %arg12[%c0_73, %c0_74], %109 {strides = array<i32>} : memref<8x128xf32, #tpu.memory_space<vmem>>, vector<8x128xf32>,
    return
  }
  func.func @transform_0(%arg0: i32) -> (i32, i32, i32) {
    %c0_i32 = arith.constant 0 : i32
    %c0_i32_0 = arith.constant 0 : i32
    %c0_i32_1 = arith.constant 0 : i32
    return %arg0, %c0_i32, %c0_i32_0 : i32, i32, i32
  }
  func.func @transform_1(%arg0: i32) -> (i32, i32, i32) {
    %c0_i32 = arith.constant 0 : i32
    %c0_i32_0 = arith.constant 0 : i32
    %c0_i32_1 = arith.constant 0 : i32
    %c0_i32_2 = arith.constant 0 : i32
    return %c0_i32, %c0_i32_0, %c0_i32_1 : i32, i32, i32
  }
  func.func @transform_2(%arg0: i32) -> (i32, i32) {
    %c0_i32 = arith.constant 0 : i32
    %c0_i32_0 = arith.constant 0 : i32
    %c0_i32_1 = arith.constant 0 : i32
    return %c0_i32, %c0_i32_0 : i32, i32
  }
  func.func @transform_3(%arg0: i32) -> (i32, i32, i32) {
    %c0_i32 = arith.constant 0 : i32
    %c0_i32_0 = arith.constant 0 : i32
    %c0_i32_1 = arith.constant 0 : i32
    %c0_i32_2 = arith.constant 0 : i32
    return %c0_i32, %c0_i32_0, %c0_i32_1 : i32, i32, i32
  }
  func.func @transform_4(%arg0: i32) -> (i32, i32) {
    %c0_i32 = arith.constant 0 : i32
    %c0_i32_0 = arith.constant 0 : i32
    %c0_i32_1 = arith.constant 0 : i32
    return %c0_i32, %c0_i32_0 : i32, i32
  }
  func.func @transform_5(%arg0: i32) -> (i32, i32, i32) {
    %c0_i32 = arith.constant 0 : i32
    %c0_i32_0 = arith.constant 0 : i32
    %c0_i32_1 = arith.constant 0 : i32
    %c0_i32_2 = arith.constant 0 : i32
    return %c0_i32, %c0_i32_0, %c0_i32_1 : i32, i32, i32
  }
  func.func @transform_6(%arg0: i32) -> (i32, i32) {
    %c0_i32 = arith.constant 0 : i32
    %c0_i32_0 = arith.constant 0 : i32
    %c0_i32_1 = arith.constant 0 : i32
    return %c0_i32, %c0_i32_0 : i32, i32
  }
  func.func @transform_7(%arg0: i32) -> (i32, i32) {
    %c0_i32 = arith.constant 0 : i32
    %c0_i32_0 = arith.constant 0 : i32
    %c0_i32_1 = arith.constant 0 : i32
    return %c0_i32, %c0_i32_0 : i32, i32
  }
  func.func @transform_8(%arg0: i32) -> (i32, i32) {
    %c0_i32 = arith.constant 0 : i32
    %c0_i32_0 = arith.constant 0 : i32
    %c0_i32_1 = arith.constant 0 : i32
    return %c0_i32, %c0_i32_0 : i32, i32
  }
  func.func @transform_9(%arg0: i32) -> (i32, i32) {
    %c0_i32 = arith.constant 0 : i32
    %c0_i32_0 = arith.constant 0 : i32
    %c0_i32_1 = arith.constant 0 : i32
    return %c0_i32, %c0_i32_0 : i32, i32
  }
  func.func @transform_10(%arg0: i32) -> (i32, i32) {
    %c0_i32 = arith.constant 0 : i32
    %c0_i32_0 = arith.constant 0 : i32
    %c0_i32_1 = arith.constant 0 : i32
    return %c0_i32, %c0_i32_0 : i32, i32
  }
  func.func @transform_11(%arg0: i32) -> (i32, i32) {
    %c0_i32 = arith.constant 0 : i32
    %c0_i32_0 = arith.constant 0 : i32
    return %arg0, %c0_i32 : i32, i32
  }
}

</mosaic_0001>

<bundles_post_ra>
// kernel: lenet_forward.1
= control target key start
LH: loop header
LB: loop body
LE: loop exit
PB: predicated region body
PF: predicated region fallthrough
CT: control target
= control target key end

     0   :  { %16 = vsyncpa [#allocation4], 0  ;;  %s7222_s0 = inlined_call_operand.vmem [shape: bf16[2,56,256], index: 0, kind: input, shape index: {}]   ;;  %s7223_s1 = inlined_call_operand.vmem [shape: bf16[4,256,256], index: 1, kind: input, shape index: {}]   ;;  %s7224_s2 = inlined_call_operand.vmem [shape: f32[1,256], index: 2, kind: input, shape index: {}]   ;;  %s7225_s3 = inlined_call_operand.vmem [shape: bf16[3,256,512], index: 3, kind: input, shape index: {}]   ;;  %s7226_s4 = inlined_call_operand.vmem [shape: f32[1,512], index: 4, kind: input, shape index: {}]   ;;  %s7227_s5 = inlined_call_operand.vmem [shape: bf16[5,128,120], index: 5, kind: input, shape index: {}]   ;;  %s7228_s6 = inlined_call_operand.vmem [shape: f32[1,120], index: 6, kind: input, shape index: {}]   ;;  %s7229_s7 = inlined_call_operand.vmem [shape: bf16[120,84], index: 7, kind: input, shape index: {}]   ;;  %s7230_s8 = inlined_call_operand.vmem [shape: f32[1,84], index: 8, kind: input, shape index: {}]   ;;  %s7231_s9 = inlined_call_operand.vmem [shape: bf16[84,128], index: 9, kind: input, shape index: {}]   ;;  %s7232_s10 = inlined_call_operand.vmem [shape: f32[1,128], index: 10, kind: input, shape index: {}]   ;;  %s7233_s11 = inlined_call_operand.hbm [shape: f32[16,128], index: 11, kind: output, shape index: {}]  }
   0x1   :  { %18 = vsyncpa [#allocation4 + $0x1], 0  ;;  %s5697_s17 = smov 0   ;;  %s5699_s18 = smov 0  }
   0x2   :  { %s5701_s19 = smov 0   ;;  %s5703_s20 = smov 0  }
   0x3 LB: > { %7235 = sst [smem:[#allocation6_spill]] %s5628_s19  ;;  %s5718_s21 = sadd.s32 4294967295, %s5632_s20   ;;  %s5632_s20 = sphi %s5703_s20, %s7244_s20   ;;  %s5628_s19 = sphi %s5701_s19, %s7243_s19   ;;  %s5624_s18 = sphi %s5699_s18, %s7242_s18   ;;  %s5620_s17 = sphi %s5697_s17, %s7241_s17  }
   0x4   : > { %s4069_s22 = sadd.s32 4294967294, %s5632_s20   ;;  %s5722_s23 = sadd.s32 1, %s5632_s20  }
   0x5   : > { %s267_s24 = sadd.s32 1, %s5628_s19  ;;  %s264_s25 = ssub.s32 %s5632_s20, %s5722_s23 }
   0x6   : > { %p277_p0 = scmp.ne.s32.totalorder %s5628_s19, %s5624_s18  ;;  %p265_p1 = scmp.eq.s32.totalorder %s264_s25, 0 }
   0x7   : > { %p278_p2 = scmp.eq.s32.totalorder %s5718_s21, 1  ;;  %p283_p3 = scmp.ne.s32.totalorder %s5624_s18, %s5620_s17 }
   0x8   : > { %p284_p4 = scmp.eq.s32.totalorder %s4069_s22, 1  ;;  %p4072_p7 = scmp.ge.s32.totalorder %s5632_s20, 1 }
   0x9   : > { %s5733_s26 = scalar_select %p265_p1, %s5628_s19, %s267_s24  }
   0xa   : > { %p5735_p5 = por %p278_p2, %p277_p0  ;;  %p5739_p6 = por %p284_p4, %p283_p3 }
   0xb   : > { %7236 = sst [smem:[#allocation7_spill]] %s5733_s26  ;;  %p340_p8 = scmp.lt.s32.totalorder %s5632_s20, 3 }
   0xd   : > { %p341_p9 = pnand %p4072_p7, %p340_p8 }
   0xe   : > { %v5025_v0 = vld [vmem:[%s7223_s1 + $0x4] ss:$8 sps:$4 sm:$0xff] (!%p341_p9)   ;;  %v5029_v2 = vld [vmem:[%s7223_s1] ss:$8 sps:$4 sm:$0xff] (!%p341_p9)   ;;  %v5031_v4 = vld [vmem:[%s7223_s1 + $0x14] ss:$8 sps:$4 sm:$0xff] (!%p341_p9)  }
   0xf   : > { %344 = sbr.rel (%p341_p9) target bundleno = 1460 (0x5b4), region = 64  ;;  %v5027_v1 = vld [vmem:[%s7223_s1 + $0x104] ss:$8 sps:$4 sm:$0xff] (!%p341_p9)   ;;  %623 = vmatprep.subr.bf16.mxu0 (!%p341_p9), %v5025_v0  ;;  %v5030_v3 = vld [vmem:[%s7223_s1 + $0x100] ss:$8 sps:$4 sm:$0xff] (!%p341_p9)   ;;  %p380_p10 = scmp.lt.s32.totalorder (!%p341_p9), %s5718_s21, 1 }
  0x10   : > { %887 = vmatprep.subr.bf16.mxu1 (!%p341_p9), %v5027_v1  ;;  %624 = vmatpush1.bf16.msra.mxu0 (!%p341_p9), %v5029_v2  ;;  %v5033_v5 = vld [vmem:[%s7223_s1 + $0x114] ss:$8 sps:$4 sm:$0xff] (!%p341_p9)   ;;  %v5035_v6 = vld [vmem:[%s7223_s1 + $0x10] ss:$8 sps:$4 sm:$0xff] (!%p341_p9)   ;;  %v5037_v8 = vld [vmem:[%s7223_s1 + $0x24] ss:$8 sps:$4 sm:$0xff] (!%p341_p9)  }
  0x11   : > { %888 = vmatpush1.bf16.msra.mxu1 (!%p341_p9), %v5030_v3  ;;  %625 = vmatprep.subr.bf16.mxu0 (!%p341_p9), %v5031_v4  ;;  %v5036_v7 = vld [vmem:[%s7223_s1 + $0x110] ss:$8 sps:$4 sm:$0xff] (!%p341_p9)   ;;  %v5039_v9 = vld [vmem:[%s7223_s1 + $0x124] ss:$8 sps:$4 sm:$0xff] (!%p341_p9)   ;;  %v5041_v10 = vld [vmem:[%s7223_s1 + $0x20] ss:$8 sps:$4 sm:$0xff] (!%p341_p9)  }
  0x12   : > { %889 = vmatprep.subr.bf16.mxu1 (!%p341_p9), %v5033_v5  ;;  %v5042_v11 = vld [vmem:[%s7223_s1 + $0x120] ss:$8 sps:$4 sm:$0xff] (!%p341_p9)   ;;  %v5043_v12 = vld [vmem:[%s7223_s1 + $0x34] ss:$8 sps:$4 sm:$0xff] (!%p341_p9)   ;;  %v5047_v14 = vld [vmem:[%s7223_s1 + $0x30] ss:$8 sps:$4 sm:$0xff] (!%p341_p9)  }
  0x13   : > { %v5045_v13 = vld [vmem:[%s7223_s1 + $0x134] ss:$8 sps:$4 sm:$0xff] (!%p341_p9)   ;;  %v5048_v15 = vld [vmem:[%s7223_s1 + $0x130] ss:$8 sps:$4 sm:$0xff] (!%p341_p9)   ;;  %v5049_v16 = vld [vmem:[%s7223_s1 + $0x44] ss:$8 sps:$4 sm:$0xff] (!%p341_p9)  }
  0x14   : > { %626 = vmatpush1.bf16.msra.mxu0 (!%p341_p9), %v5035_v6  ;;  %v5051_v17 = vld [vmem:[%s7223_s1 + $0x144] ss:$8 sps:$4 sm:$0xff] (!%p341_p9)   ;;  %v5053_v18 = vld [vmem:[%s7223_s1 + $0x40] ss:$8 sps:$4 sm:$0xff] (!%p341_p9)   ;;  %v5055_v20 = vld [vmem:[%s7223_s1 + $0x54] ss:$8 sps:$4 sm:$0xff] (!%p341_p9)  }
  0x15   : > { %890 = vmatpush1.bf16.msra.mxu1 (!%p341_p9), %v5036_v7  ;;  %627 = vmatprep.subr.bf16.mxu0 (!%p341_p9), %v5037_v8  ;;  %v5054_v19 = vld [vmem:[%s7223_s1 + $0x140] ss:$8 sps:$4 sm:$0xff] (!%p341_p9)   ;;  %v5057_v21 = vld [vmem:[%s7223_s1 + $0x154] ss:$8 sps:$4 sm:$0xff] (!%p341_p9)   ;;  %v5059_v22 = vld [vmem:[%s7223_s1 + $0x50] ss:$8 sps:$4 sm:$0xff] (!%p341_p9)  }
  0x16   : > { %891 = vmatprep.subr.bf16.mxu1 %v5039_v9  ;;  %v5060_v23 = vld [vmem:[%s7223_s1 + $0x150] ss:$8 sps:$4 sm:$0xff]   ;;  %v5061_v24 = vld [vmem:[%s7223_s1 + $0x64] ss:$8 sps:$4 sm:$0xff]   ;;  %v5065_v26 = vld [vmem:[%s7223_s1 + $0x60] ss:$8 sps:$4 sm:$0xff]  }
  0x17   : > { %v5063_v25 = vld [vmem:[%s7223_s1 + $0x164] ss:$8 sps:$4 sm:$0xff]   ;;  %v5066_v27 = vld [vmem:[%s7223_s1 + $0x160] ss:$8 sps:$4 sm:$0xff]   ;;  %v5067_v28 = vld [vmem:[%s7223_s1 + $0x74] ss:$8 sps:$4 sm:$0xff]  }
  0x18   : > { %628 = vmatpush1.bf16.msra.mxu0 %v5041_v10  ;;  %v5069_v29 = vld [vmem:[%s7223_s1 + $0x174] ss:$8 sps:$4 sm:$0xff]   ;;  %v5071_v30 = vld [vmem:[%s7223_s1 + $0x70] ss:$8 sps:$4 sm:$0xff]   ;;  %v5073_v32 = vld [vmem:[%s7223_s1 + $0x84] ss:$8 sps:$4 sm:$0xff]  }
  0x19   : > { %892 = vmatpush1.bf16.msra.mxu1 %v5042_v11  ;;  %629 = vmatprep.subr.bf16.mxu0 %v5043_v12  ;;  %v5072_v31 = vld [vmem:[%s7223_s1 + $0x170] ss:$8 sps:$4 sm:$0xff]   ;;  %v5075_v33 = vld [vmem:[%s7223_s1 + $0x184] ss:$8 sps:$4 sm:$0xff]   ;;  %v5077_v34 = vld [vmem:[%s7223_s1 + $0x80] ss:$8 sps:$4 sm:$0xff]  }
  0x1a   : > { %893 = vmatprep.subr.bf16.mxu1 %v5045_v13  ;;  %v5078_v35 = vld [vmem:[%s7223_s1 + $0x180] ss:$8 sps:$4 sm:$0xff]   ;;  %v5079_v36 = vld [vmem:[%s7223_s1 + $0x94] ss:$8 sps:$4 sm:$0xff]   ;;  %s381_s14 = scalar_select %p380_p10, %s5718_s21, 1  ;;  %vm5635_vm0 = vmmov 0  }
  0x1b   : > { %v5081_v37 = vld [vmem:[%s7223_s1 + $0x194] ss:$8 sps:$4 sm:$0xff]   ;;  %v5083_v38 = vld [vmem:[%s7223_s1 + $0x90] ss:$8 sps:$4 sm:$0xff]   ;;  %v5085_v40 = vld [vmem:[%s7223_s1 + $0xa4] ss:$8 sps:$4 sm:$0xff]  }
  0x1c   : > { %630 = vmatpush1.bf16.msra.mxu0 %v5047_v14  ;;  %v5084_v39 = vld [vmem:[%s7223_s1 + $0x190] ss:$8 sps:$4 sm:$0xff]   ;;  %s4983_s13 = smul.u32 56, %s381_s14  ;;  %v5087_v41 = vld [vmem:[%s7223_s1 + $0x1a4] ss:$8 sps:$4 sm:$0xff]   ;;  %vm3850_vm1 = vcmask 1043456  }
  0x1d   : > { %894 = vmatpush1.bf16.msra.mxu1 %v5048_v15  ;;  %631 = vmatprep.subr.bf16.mxu0 %v5049_v16  ;;  %v5089_v42 = vld [vmem:[%s7223_s1 + $0xa0] ss:$8 sps:$4 sm:$0xff]   ;;  %v5091_v44 = vld [vmem:[%s7223_s1 + $0xb4] ss:$8 sps:$4 sm:$0xff]   ;;  %v5095_v46 = vld [vmem:[%s7223_s1 + $0xb0] ss:$8 sps:$4 sm:$0xff]  }
  0x1e   : > { %895 = vmatprep.subr.bf16.mxu1 %v5051_v17  ;;  %v5090_v43 = vld [vmem:[%s7223_s1 + $0x1a0] ss:$8 sps:$4 sm:$0xff]   ;;  %s5885_s12 = scalar_lea.vmem %s7222_s0, %s4983_s13  ;;  %v5093_v45 = vld [vmem:[%s7223_s1 + $0x1b4] ss:$8 sps:$4 sm:$0xff]   ;;  %v5096_v47 = vld [vmem:[%s7223_s1 + $0x1b0] ss:$8 sps:$4 sm:$0xff]  }
  0x1f   : > { %v5897_v48 = vld [vmem:[%s5885_s12 + $0x4] ss:$8 sps:$4 sm:$0xff]   ;;  %v5101_v51 = vld [vmem:[%s7223_s1 + $0xc0] ss:$8 sps:$4 sm:$0xff]   ;;  %v5103_v53 = vld [vmem:[%s7223_s1 + $0xd4] ss:$8 sps:$4 sm:$0xff]  }
  0x20   : > { %632 = vmatpush1.bf16.msra.mxu0 %v5053_v18  ;;  %v5097_v49 = vld [vmem:[%s7223_s1 + $0xc4] ss:$8 sps:$4 sm:$0xff]   ;;  %655 = vmatprep.mubr.bf16.mxu0 %v5897_v48  ;;  %v5102_v52 = vld [vmem:[%s7223_s1 + $0x1c0] ss:$8 sps:$4 sm:$0xff]   ;;  %v5105_v54 = vld [vmem:[%s7223_s1 + $0x1d4] ss:$8 sps:$4 sm:$0xff]  }
  0x21   : > { %896 = vmatpush1.bf16.msra.mxu1 %v5054_v19  ;;  %633 = vmatprep.subr.bf16.mxu0 %v5055_v20  ;;  %v5099_v50 = vld [vmem:[%s7223_s1 + $0x1c4] ss:$8 sps:$4 sm:$0xff]   ;;  %v5107_v55 = vld [vmem:[%s7223_s1 + $0xd0] ss:$8 sps:$4 sm:$0xff]   ;;  %v5113_v59 = vld [vmem:[%s7223_s1 + $0xe0] ss:$8 sps:$4 sm:$0xff]  }
  0x22   : > { %897 = vmatprep.subr.bf16.mxu1 %v5057_v21  ;;  %919 = vmatprep.mubr.bf16.mxu1 %v5897_v48  ;;  %v5108_v56 = vld [vmem:[%s7223_s1 + $0x1d0] ss:$8 sps:$4 sm:$0xff]   ;;  %v5109_v57 = vld [vmem:[%s7223_s1 + $0xe4] ss:$8 sps:$4 sm:$0xff]   ;;  %v5114_v60 = vld [vmem:[%s7223_s1 + $0x1e0] ss:$8 sps:$4 sm:$0xff]  }
  0x23   : > { %v5111_v58 = vld [vmem:[%s7223_s1 + $0x1e4] ss:$8 sps:$4 sm:$0xff]   ;;  %v5115_v61 = vld [vmem:[%s7223_s1 + $0xf4] ss:$8 sps:$4 sm:$0xff]   ;;  %v5119_v63 = vld [vmem:[%s7223_s1 + $0xf0] ss:$8 sps:$4 sm:$0xff]  }
  0x24   : > { %634 = vmatpush1.bf16.msra.mxu0 %v5059_v22  ;;  %v5117_v62 = vld [vmem:[%s7223_s1 + $0x1f4] ss:$8 sps:$4 sm:$0xff]   ;;  %v5120_v0 = vld [vmem:[%s7223_s1 + $0x1f0] ss:$8 sps:$4 sm:$0xff]   ;;  %v5126_v1 = vld [vmem:[%s7223_s1 + $0x204] ss:$8 sps:$4 sm:$0xff]  }
  0x25   : > { %898 = vmatpush1.bf16.msra.mxu1 %v5060_v23  ;;  %635 = vmatprep.subr.bf16.mxu0 %v5061_v24  ;;  %v5129_v2 = vld [vmem:[%s7223_s1 + $0x304] ss:$8 sps:$4 sm:$0xff]   ;;  %v5956_v3 = vld [vmem:[%s5885_s12] ss:$8 sps:$4 sm:$0xff]   ;;  %v5132_v6 = vld [vmem:[%s7223_s1 + $0x214] ss:$8 sps:$4 sm:$0xff]  }
  0x26   : > { %899 = vmatprep.subr.bf16.mxu1 %v5063_v25  ;;  %v5124_v4 = vld [vmem:[%s7223_s1 + $0x200] ss:$8 sps:$4 sm:$0xff]   ;;  %v5135_v7 = vld [vmem:[%s7223_s1 + $0x314] ss:$8 sps:$4 sm:$0xff]   ;;  %v5130_v9 = vld [vmem:[%s7223_s1 + $0x210] ss:$8 sps:$4 sm:$0xff]  }
  0x27   : > { %v5127_v5 = vld [vmem:[%s7223_s1 + $0x300] ss:$8 sps:$4 sm:$0xff]   ;;  %v5971_v8 = vld [vmem:[%s5885_s12 + $0x14] ss:$8 sps:$4 sm:$0xff]   ;;  %v5133_v10 = vld [vmem:[%s7223_s1 + $0x310] ss:$8 sps:$4 sm:$0xff]  }
  0x28   : > { %636 = vmatpush1.bf16.msra.mxu0 %v5065_v26  ;;  %v5141_v11 = vld [vmem:[%s7223_s1 + $0x224] ss:$8 sps:$4 sm:$0xff]   ;;  %v5990_v13 = vld [vmem:[%s5885_s12 + $0x10] ss:$8 sps:$4 sm:$0xff]   ;;  %v5139_v14 = vld [vmem:[%s7223_s1 + $0x220] ss:$8 sps:$4 sm:$0xff]  }
  0x29   : > { %900 = vmatpush1.bf16.msra.mxu1 %v5066_v27  ;;  %637 = vmatprep.subr.bf16.mxu0 %v5067_v28  ;;  %v5144_v12 = vld [vmem:[%s7223_s1 + $0x324] ss:$8 sps:$4 sm:$0xff]   ;;  %v5142_v15 = vld [vmem:[%s7223_s1 + $0x320] ss:$8 sps:$4 sm:$0xff]   ;;  %v5147_v16 = vld [vmem:[%s7223_s1 + $0x234] ss:$8 sps:$4 sm:$0xff]  }
  0x2a   : > { %901 = vmatprep.subr.bf16.mxu1 %v5069_v29  ;;  %v5150_v17 = vld [vmem:[%s7223_s1 + $0x334] ss:$8 sps:$4 sm:$0xff]   ;;  %v6005_v18 = vld [vmem:[%s5885_s12 + $0x24] ss:$8 sps:$4 sm:$0xff]   ;;  %v5145_v19 = vld [vmem:[%s7223_s1 + $0x230] ss:$8 sps:$4 sm:$0xff]  }
  0x2b   : > { %v5148_v20 = vld [vmem:[%s7223_s1 + $0x330] ss:$8 sps:$4 sm:$0xff]   ;;  %v5153_v21 = vld [vmem:[%s7223_s1 + $0x244] ss:$8 sps:$4 sm:$0xff]   ;;  %v5151_v23 = vld [vmem:[%s7223_s1 + $0x240] ss:$8 sps:$4 sm:$0xff]  }
  0x2c   : > { %638 = vmatpush1.bf16.msra.mxu0 %v5071_v30  ;;  %v5156_v22 = vld [vmem:[%s7223_s1 + $0x344] ss:$8 sps:$4 sm:$0xff]   ;;  %v5154_v24 = vld [vmem:[%s7223_s1 + $0x340] ss:$8 sps:$4 sm:$0xff]   ;;  %v5159_v26 = vld [vmem:[%s7223_s1 + $0x254] ss:$8 sps:$4 sm:$0xff]  }
  0x2d   : > { %902 = vmatpush1.bf16.msra.mxu1 %v5072_v31  ;;  %639 = vmatprep.subr.bf16.mxu0 %v5073_v32  ;;  %v6030_v25 = vld [vmem:[%s5885_s12 + $0x20] ss:$8 sps:$4 sm:$0xff]   ;;  %v5162_v27 = vld [vmem:[%s7223_s1 + $0x354] ss:$8 sps:$4 sm:$0xff]   ;;  %v5157_v30 = vld [vmem:[%s7223_s1 + $0x250] ss:$8 sps:$4 sm:$0xff]  }
  0x2e   : > { %903 = vmatprep.subr.bf16.mxu1 %v5075_v33  ;;  %v392_v28 = vld [vmem:[%s5885_s12 + $0x30] sm:$0xff]  ;;  %v5165_v32 = vld [vmem:[%s7223_s1 + $0x264] ss:$8 sps:$4 sm:$0xff]   ;;  %vm3846_vm2 = vcmask 982016   ;;  %vm3951_vm3 = vcmask 1041408   ;;  %vm3947_vm4 = vcmask 687104  }
  0x2f   : > { %v6039_v29 = vcombine.high %v392_v28, %v392_v28  ;;  %v5160_v31 = vld [vmem:[%s7223_s1 + $0x350] ss:$8 sps:$4 sm:$0xff]   ;;  %v5168_v33 = vld [vmem:[%s7223_s1 + $0x364] ss:$8 sps:$4 sm:$0xff]   ;;  %s377_s15 = sand.u32 1, %s5624_s18   ;;  %s4751_s24 = sshll.u32 %s5718_s21, 7 }
  0x30   : > { %640 = vmatpush1.bf16.msra.mxu0 %v5077_v34  ;;  %v5163_v34 = vld [vmem:[%s7223_s1 + $0x260] ss:$8 sps:$4 sm:$0xff]   ;;  %s4073_s19 = sshll.u32 %s377_s15, 3  ;;  %s7180_s12 = scalar_lea.hbm %s7233_s11, %s4751_s24 }
  0x31   : > { %904 = vmatpush1.bf16.msra.mxu1 %v5078_v35  ;;  %641 = vmatprep.subr.bf16.mxu0 %v5079_v36  ;;  %v6060_v35 = vcombine.low %v392_v28, %v392_v28  ;;  %v5166_v36 = vld [vmem:[%s7223_s1 + $0x360] ss:$8 sps:$4 sm:$0xff]   ;;  %s379_s13 = scalar_lea.vmem [#allocation3], %s4073_s19  ;;  %s3997_s30 = scalar_lea.sflag [#allocation4], %s377_s15 }
  0x32   : > { %905 = vmatprep.subr.bf16.mxu1 %v5081_v37  ;;  %v5171_v37 = vld [vmem:[%s7223_s1 + $0x274] ss:$8 sps:$4 sm:$0xff]   ;;  %v5255_v28 = vld [vmem:[%s7225_s3 + $0x288] ss:$16 sps:$4 sm:$0xff]   ;;  %s4010_s25 = sshll.u32 %s379_s13, 4  ;;  %s5636_s26 = smov [#allocation3]   ;;  %s7182_s25 = int_to_ptr.vmem [resolvable:$true] %s4010_s25 }
  0x33   : > { %s5570_s21 = scalar_lea.vmem %s7182_s25, 128  ;;  %s5574_s19 = sshll.u32 %s5636_s26, 4  ;;  %s5575_s19 = int_to_ptr.vmem [resolvable:$false] %s5574_s19 }
  0x34   : > { %642 = vmatpush1.bf16.msra.mxu0 %v5083_v38  ;;  %v5174_v38 = vld [vmem:[%s7223_s1 + $0x374] ss:$8 sps:$4 sm:$0xff]   ;;  %p5571_p11 = scmp.ne.s32.totalorder %s7182_s25, %s5570_s21  ;;  %s5576_s16 = scalar_lea.vmem %s5575_s19, 256 }
  0x35   : > { %906 = vmatpush1.bf16.msra.mxu1 %v5084_v39  ;;  %643 = vmatprep.subr.bf16.mxu0 %v5085_v40  ;;  %v5169_v39 = vld [vmem:[%s7223_s1 + $0x270] ss:$8 sps:$4 sm:$0xff]   ;;  %p5577_p0 = scmp.lt.s32.totalorder %s7182_s25, %s5575_s19  ;;  %p5578_p1 = scmp.lt.s32.totalorder %s5576_s16, %s5570_s21 }
  0x36   : > { %907 = vmatprep.subr.bf16.mxu1 %v5087_v41  ;;  %v5172_v40 = vld [vmem:[%s7223_s1 + $0x370] ss:$8 sps:$4 sm:$0xff]   ;;  %v5177_v41 = vld [vmem:[%s7223_s1 + $0x284] ss:$8 sps:$4 sm:$0xff]   ;;  %p5572_p12 = pnand %p5571_p11, %p5735_p5 }
  0x37   : > { %p5579_p2 = por %p5578_p1, %p5577_p0 }
  0x38   : > { %644 = vmatpush1.bf16.msra.mxu0 %v5089_v42  ;;  %v5180_v42 = vld [vmem:[%s7223_s1 + $0x384] ss:$8 sps:$4 sm:$0xff]   ;;  %p5573_p13 = pneg %p5572_p12 }
  0x39   : > { %908 = vmatpush1.bf16.msra.mxu1 %v5090_v43  ;;  %645 = vmatprep.subr.bf16.mxu0 %v5091_v44  ;;  %v5175_v43 = vld [vmem:[%s7223_s1 + $0x280] ss:$8 sps:$4 sm:$0xff]  }
  0x3a   : > { %909 = vmatprep.subr.bf16.mxu1 %v5093_v45  ;;  %v5178_v44 = vld [vmem:[%s7223_s1 + $0x380] ss:$8 sps:$4 sm:$0xff]   ;;  %v5183_v45 = vld [vmem:[%s7223_s1 + $0x294] ss:$8 sps:$4 sm:$0xff]   ;;  %p5580_p3 = pnand %p5579_p2, %p5573_p13 }
  0x3c   : > { %646 = vmatpush1.bf16.msra.mxu0 %v5095_v46  ;;  %v5186_v46 = vld [vmem:[%s7223_s1 + $0x394] ss:$8 sps:$4 sm:$0xff]  }
  0x3d   : > { %910 = vmatpush1.bf16.msra.mxu1 %v5096_v47  ;;  %647 = vmatprep.subr.bf16.mxu0 %v5097_v49  ;;  %v5181_v47 = vld [vmem:[%s7223_s1 + $0x290] ss:$8 sps:$4 sm:$0xff]   ;;  %v5192_v49 = vld [vmem:[%s7223_s1 + $0x2a4] ss:$8 sps:$4 sm:$0xff]  }
  0x3e   : > { %911 = vmatprep.subr.bf16.mxu1 %v5099_v50  ;;  %v5195_v50 = vld [vmem:[%s7223_s1 + $0x3a4] ss:$8 sps:$4 sm:$0xff]  }
  0x40   : > { %648 = vmatpush1.bf16.msra.mxu0 %v5101_v51  ;;  %v5190_v51 = vld [vmem:[%s7223_s1 + $0x2a0] ss:$8 sps:$4 sm:$0xff]  }
  0x41   : > { %912 = vmatpush1.bf16.msra.mxu1 %v5102_v52  ;;  %649 = vmatprep.subr.bf16.mxu0 %v5103_v53  ;;  %v5193_v52 = vld [vmem:[%s7223_s1 + $0x3a0] ss:$8 sps:$4 sm:$0xff]   ;;  %v5198_v53 = vld [vmem:[%s7223_s1 + $0x2b4] ss:$8 sps:$4 sm:$0xff]  }
  0x42   : > { %913 = vmatprep.subr.bf16.mxu1 %v5105_v54  ;;  %v5201_v54 = vld [vmem:[%s7223_s1 + $0x3b4] ss:$8 sps:$4 sm:$0xff]  }
  0x44   : > { %650 = vmatpush1.bf16.msra.mxu0 %v5107_v55  ;;  %v5196_v55 = vld [vmem:[%s7223_s1 + $0x2b0] ss:$8 sps:$4 sm:$0xff]  }
  0x45   : > { %914 = vmatpush1.bf16.msra.mxu1 %v5108_v56  ;;  %651 = vmatprep.subr.bf16.mxu0 %v5109_v57  ;;  %v5199_v56 = vld [vmem:[%s7223_s1 + $0x3b0] ss:$8 sps:$4 sm:$0xff]   ;;  %v5204_v57 = vld [vmem:[%s7223_s1 + $0x2c4] ss:$8 sps:$4 sm:$0xff]  }
  0x46   : > { %915 = vmatprep.subr.bf16.mxu1 %v5111_v58  ;;  %v5207_v58 = vld [vmem:[%s7223_s1 + $0x3c4] ss:$8 sps:$4 sm:$0xff]  }
  0x48   : > { %652 = vmatpush1.bf16.msra.mxu0 %v5113_v59  ;;  %v5202_v59 = vld [vmem:[%s7223_s1 + $0x2c0] ss:$8 sps:$4 sm:$0xff]  }
  0x49   : > { %916 = vmatpush1.bf16.msra.mxu1 %v5114_v60  ;;  %653 = vmatprep.subr.bf16.mxu0 %v5115_v61  ;;  %v5205_v60 = vld [vmem:[%s7223_s1 + $0x3c0] ss:$8 sps:$4 sm:$0xff]   ;;  %v5211_v61 = vld [vmem:[%s7223_s1 + $0x2d4] ss:$8 sps:$4 sm:$0xff]  }
  0x4a   : > { %917 = vmatprep.subr.bf16.mxu1 %v5117_v62  ;;  %v5214_v62 = vld [vmem:[%s7223_s1 + $0x3d4] ss:$8 sps:$4 sm:$0xff]  }
  0x4c   : > { %654 = vmatpush1.bf16.msra.mxu0 %v5119_v63  ;;  %v5209_v63 = vld [vmem:[%s7223_s1 + $0x2d0] ss:$8 sps:$4 sm:$0xff]  }
  0x4d   : > { %918 = vmatpush1.bf16.msra.mxu1 %v5120_v0  ;;  %1211 = vmatprep.subr.bf16.mxu0 %v5126_v1  ;;  %v5212_v0 = vld [vmem:[%s7223_s1 + $0x3d0] ss:$8 sps:$4 sm:$0xff]   ;;  %v5218_v1 = vld [vmem:[%s7223_s1 + $0x2e4] ss:$8 sps:$4 sm:$0xff]  }
  0x4e   : > { %1475 = vmatprep.subr.bf16.mxu1 %v5129_v2  ;;  %v5221_v2 = vld [vmem:[%s7223_s1 + $0x3e4] ss:$8 sps:$4 sm:$0xff]  }
  0x4f   : > { %656 = vmatmul.mubr.bf16.vlgmr.msra.gmra.mrb[0].mxu0 %v5956_v3 }
  0x50   : > { %920 = vmatmul.mubr.bf16.vlgmr.msra.gmra.mrb[0].mxu1 %v5956_v3  ;;  %1212 = vmatpush1.bf16.msra.mxu0 %v5124_v4  ;;  %v5216_v4 = vld [vmem:[%s7223_s1 + $0x2e0] ss:$8 sps:$4 sm:$0xff]  }
  0x51   : > { %1476 = vmatpush1.bf16.msra.mxu1 %v5127_v5  ;;  %1213 = vmatprep.subr.bf16.mxu0 %v5132_v6  ;;  %v5219_v5 = vld [vmem:[%s7223_s1 + $0x3e0] ss:$8 sps:$4 sm:$0xff]   ;;  %v5224_v6 = vld [vmem:[%s7223_s1 + $0x2f4] ss:$8 sps:$4 sm:$0xff]  }
  0x52   : > { %1477 = vmatprep.subr.bf16.mxu1 %v5135_v7  ;;  %665 = vmatprep.mubr.bf16.mxu0 %v5971_v8  ;;  %v5227_v7 = vld [vmem:[%s7223_s1 + $0x3f4] ss:$8 sps:$4 sm:$0xff]  }
  0x53   : > { %929 = vmatprep.mubr.bf16.mxu1 %v5971_v8 }
  0x54   : > { %1214 = vmatpush1.bf16.msra.mxu0 %v5130_v9  ;;  %v5222_v9 = vld [vmem:[%s7223_s1 + $0x2f0] ss:$8 sps:$4 sm:$0xff]  }
  0x55   : > { %1478 = vmatpush1.bf16.msra.mxu1 %v5133_v10  ;;  %1215 = vmatprep.subr.bf16.mxu0 %v5141_v11  ;;  %v5225_v10 = vld [vmem:[%s7223_s1 + $0x3f0] ss:$8 sps:$4 sm:$0xff]  }
  0x56   : > { %1479 = vmatprep.subr.bf16.mxu1 %v5144_v12  ;;  %v5231_v11 = vld [vmem:[%s7225_s3 + $0x208] ss:$16 sps:$4 sm:$0xff]   ;;  %v5233_v12 = vld [vmem:[%s7225_s3 + $0x20c] ss:$16 sps:$4 sm:$0xff]  }
  0x57   : > { %666 = vmatmul.mubr.bf16.gmra.mrb[4].mxu0 %v5990_v13 }
  0x58   : > { %930 = vmatmul.mubr.bf16.gmra.mrb[4].mxu1 %v5990_v13  ;;  %1216 = vmatpush1.bf16.msra.mxu0 %v5139_v14  ;;  %v5239_v14 = vld [vmem:[%s7225_s3 + $0x22c] ss:$16 sps:$4 sm:$0xff]  }
  0x59   : > { %1480 = vmatpush1.bf16.msra.mxu1 %v5142_v15  ;;  %1217 = vmatprep.subr.bf16.mxu0 %v5147_v16  ;;  %v5234_v15 = vld [vmem:[%s7225_s3 + $0x220] ss:$16 sps:$4 sm:$0xff]   ;;  %v5237_v16 = vld [vmem:[%s7225_s3 + $0x228] ss:$16 sps:$4 sm:$0xff]  }
  0x5a   : > { %1481 = vmatprep.subr.bf16.mxu1 %v5150_v17  ;;  %675 = vmatprep.mubr.bf16.mxu0 %v6005_v18  ;;  %v5242_v17 = vld [vmem:[%s7225_s3 + $0x244] ss:$16 sps:$4 sm:$0xff]  }
  0x5b   : > { %939 = vmatprep.mubr.bf16.mxu1 %v6005_v18 }
  0x5c   : > { %1218 = vmatpush1.bf16.msra.mxu0 %v5145_v19  ;;  %v5240_v19 = vld [vmem:[%s7225_s3 + $0x240] ss:$16 sps:$4 sm:$0xff]  }
  0x5d   : > { %1482 = vmatpush1.bf16.msra.mxu1 %v5148_v20  ;;  %1219 = vmatprep.subr.bf16.mxu0 %v5153_v21  ;;  %v5243_v20 = vld [vmem:[%s7225_s3 + $0x248] ss:$16 sps:$4 sm:$0xff]   ;;  %v5248_v21 = vld [vmem:[%s7225_s3 + $0x264] ss:$16 sps:$4 sm:$0xff]  }
  0x5e   : > { %1483 = vmatprep.subr.bf16.mxu1 %v5156_v22  ;;  %v5251_v22 = vld [vmem:[%s7225_s3 + $0x26c] ss:$16 sps:$4 sm:$0xff]  }
  0x5f   : > { %676 = vmatmul.mubr.bf16.gmra.mrb[8].mxu0 %v6030_v25 }
  0x60   : > { %940 = vmatmul.mubr.bf16.gmra.mrb[8].mxu1 %v6030_v25  ;;  %1220 = vmatpush1.bf16.msra.mxu0 %v5151_v23  ;;  %v5246_v23 = vld [vmem:[%s7225_s3 + $0x260] ss:$16 sps:$4 sm:$0xff]  }
  0x61   : > { %1484 = vmatpush1.bf16.msra.mxu1 %v5154_v24  ;;  %1221 = vmatprep.subr.bf16.mxu0 %v5159_v26  ;;  %v5249_v24 = vld [vmem:[%s7225_s3 + $0x268] ss:$16 sps:$4 sm:$0xff]   ;;  %v5252_v26 = vld [vmem:[%s7225_s3 + $0x280] ss:$16 sps:$4 sm:$0xff]  }
  0x62   : > { %1485 = vmatprep.subr.bf16.mxu1 %v5162_v27  ;;  %685 = vmatprep.mubr.bf16.mxu0 %v6039_v29  ;;  %v5257_v27 = vld [vmem:[%s7225_s3 + $0x28c] ss:$16 sps:$4 sm:$0xff]  }
  0x63   : > { %949 = vmatprep.mubr.bf16.mxu1 %v6039_v29 }
  0x64   : > { %1222 = vmatpush1.bf16.msra.mxu0 %v5157_v30  ;;  %v5263_v30 = vld [vmem:[%s7225_s3 + $0x2ac] ss:$16 sps:$4 sm:$0xff]  }
  0x65   : > { %1486 = vmatpush1.bf16.msra.mxu1 %v5160_v31  ;;  %1223 = vmatprep.subr.bf16.mxu0 %v5165_v32  ;;  %v5258_v31 = vld [vmem:[%s7225_s3 + $0x2a0] ss:$16 sps:$4 sm:$0xff]   ;;  %v5261_v32 = vld [vmem:[%s7225_s3 + $0x2a8] ss:$16 sps:$4 sm:$0xff]  }
  0x66   : > { %1487 = vmatprep.subr.bf16.mxu1 %v5168_v33  ;;  %v5266_v33 = vld [vmem:[%s7225_s3 + $0x2c4] ss:$16 sps:$4 sm:$0xff]  }
  0x67   : > { %686 = vmatmul.mubr.bf16.gmra.mrb[12].mxu0 %v6060_v35 }
  0x68   : > { %950 = vmatmul.mubr.bf16.gmra.mrb[12].mxu1 %v6060_v35  ;;  %1224 = vmatpush1.bf16.msra.mxu0 %v5163_v34  ;;  %v5269_v34 = vld [vmem:[%s7225_s3 + $0x2cc] ss:$16 sps:$4 sm:$0xff]  }
  0x69   : > { %1488 = vmatpush1.bf16.msra.mxu1 %v5166_v36  ;;  %1225 = vmatprep.subr.bf16.mxu0 %v5171_v37  ;;  %v5267_v36 = vld [vmem:[%s7225_s3 + $0x2c8] ss:$16 sps:$4 sm:$0xff]   ;;  %v5272_v37 = vld [vmem:[%s7225_s3 + $0x2e4] ss:$16 sps:$4 sm:$0xff]  }
  0x6a   : > { %1489 = vmatprep.subr.bf16.mxu1 %v5174_v38  ;;  %1243 = vmatprep.mubr.bf16.mxu0 %v5897_v48  ;;  %v5275_v38 = vld [vmem:[%s7225_s3 + $0x2ec] ss:$16 sps:$4 sm:$0xff]  }
  0x6b   : > { %1507 = vmatprep.mubr.bf16.mxu1 %v5897_v48  ;;  %v5184_v48 = vld [vmem:[%s7223_s1 + $0x390] ss:$8 sps:$4 sm:$0xff]  }
  0x6c   : > { %1226 = vmatpush1.bf16.msra.mxu0 %v5169_v39  ;;  %v5270_v39 = vld [vmem:[%s7225_s3 + $0x2e0] ss:$16 sps:$4 sm:$0xff]  }
  0x6d   : > { %1490 = vmatpush1.bf16.msra.mxu1 %v5172_v40  ;;  %1227 = vmatprep.subr.bf16.mxu0 %v5177_v41  ;;  %v5273_v40 = vld [vmem:[%s7225_s3 + $0x2e8] ss:$16 sps:$4 sm:$0xff]   ;;  %v5278_v41 = vld [vmem:[%s7225_s3 + $0x304] ss:$16 sps:$4 sm:$0xff]  }
  0x6e   : > { %1491 = vmatprep.subr.bf16.mxu1 %v5180_v42  ;;  %v5281_v42 = vld [vmem:[%s7225_s3 + $0x30c] ss:$16 sps:$4 sm:$0xff]  }
  0x70   : > { %1228 = vmatpush1.bf16.msra.mxu0 %v5175_v43  ;;  %v5276_v43 = vld [vmem:[%s7225_s3 + $0x300] ss:$16 sps:$4 sm:$0xff]  }
  0x71   : > { %1492 = vmatpush1.bf16.msra.mxu1 %v5178_v44  ;;  %1229 = vmatprep.subr.bf16.mxu0 %v5183_v45  ;;  %v5279_v44 = vld [vmem:[%s7225_s3 + $0x308] ss:$16 sps:$4 sm:$0xff]   ;;  %v5284_v45 = vld [vmem:[%s7225_s3 + $0x324] ss:$16 sps:$4 sm:$0xff]  }
  0x72   : > { %1493 = vmatprep.subr.bf16.mxu1 %v5186_v46  ;;  %v5287_v46 = vld [vmem:[%s7225_s3 + $0x32c] ss:$16 sps:$4 sm:$0xff]  }
  0x74   : > { %1230 = vmatpush1.bf16.msra.mxu0 %v5181_v47  ;;  %v5282_v47 = vld [vmem:[%s7225_s3 + $0x320] ss:$16 sps:$4 sm:$0xff]  }
  0x75   : > { %1494 = vmatpush1.bf16.msra.mxu1 %v5184_v48  ;;  %1231 = vmatprep.subr.bf16.mxu0 %v5192_v49  ;;  %v5285_v48 = vld [vmem:[%s7225_s3 + $0x328] ss:$16 sps:$4 sm:$0xff]   ;;  %v5290_v49 = vld [vmem:[%s7225_s3 + $0x344] ss:$16 sps:$4 sm:$0xff]  }
  0x76   : > { %1495 = vmatprep.subr.bf16.mxu1 %v5195_v50  ;;  %v5293_v50 = vld [vmem:[%s7225_s3 + $0x34c] ss:$16 sps:$4 sm:$0xff]  }
  0x78   : > { %1232 = vmatpush1.bf16.msra.mxu0 %v5190_v51  ;;  %v5288_v51 = vld [vmem:[%s7225_s3 + $0x340] ss:$16 sps:$4 sm:$0xff]  }
  0x79   : > { %1496 = vmatpush1.bf16.msra.mxu1 %v5193_v52  ;;  %1233 = vmatprep.subr.bf16.mxu0 %v5198_v53  ;;  %v5291_v52 = vld [vmem:[%s7225_s3 + $0x348] ss:$16 sps:$4 sm:$0xff]   ;;  %v5296_v53 = vld [vmem:[%s7225_s3 + $0x364] ss:$16 sps:$4 sm:$0xff]  }
  0x7a   : > { %1497 = vmatprep.subr.bf16.mxu1 %v5201_v54  ;;  %v5299_v54 = vld [vmem:[%s7225_s3 + $0x36c] ss:$16 sps:$4 sm:$0xff]  }
  0x7c   : > { %1234 = vmatpush1.bf16.msra.mxu0 %v5196_v55  ;;  %v5294_v55 = vld [vmem:[%s7225_s3 + $0x360] ss:$16 sps:$4 sm:$0xff]  }
  0x7d   : > { %1498 = vmatpush1.bf16.msra.mxu1 %v5199_v56  ;;  %1235 = vmatprep.subr.bf16.mxu0 %v5204_v57  ;;  %v5297_v56 = vld [vmem:[%s7225_s3 + $0x368] ss:$16 sps:$4 sm:$0xff]   ;;  %v5302_v57 = vld [vmem:[%s7225_s3 + $0x384] ss:$16 sps:$4 sm:$0xff]  }
  0x7e   : > { %1499 = vmatprep.subr.bf16.mxu1 %v5207_v58  ;;  %v5305_v58 = vld [vmem:[%s7225_s3 + $0x38c] ss:$16 sps:$4 sm:$0xff]  }
  0x80   : > { %1236 = vmatpush1.bf16.msra.mxu0 %v5202_v59  ;;  %v5300_v59 = vld [vmem:[%s7225_s3 + $0x380] ss:$16 sps:$4 sm:$0xff]  }
  0x81   : > { %1500 = vmatpush1.bf16.msra.mxu1 %v5205_v60  ;;  %1237 = vmatprep.subr.bf16.mxu0 %v5211_v61  ;;  %v5303_v60 = vld [vmem:[%s7225_s3 + $0x388] ss:$16 sps:$4 sm:$0xff]   ;;  %v5308_v61 = vld [vmem:[%s7225_s3 + $0x3a4] ss:$16 sps:$4 sm:$0xff]  }
  0x82   : > { %1501 = vmatprep.subr.bf16.mxu1 %v5214_v62  ;;  %v5311_v62 = vld [vmem:[%s7225_s3 + $0x3ac] ss:$16 sps:$4 sm:$0xff]  }
  0x84   : > { %1238 = vmatpush1.bf16.msra.mxu0 %v5209_v63  ;;  %v5306_v63 = vld [vmem:[%s7225_s3 + $0x3a0] ss:$16 sps:$4 sm:$0xff]  }
  0x85   : > { %1502 = vmatpush1.bf16.msra.mxu1 %v5212_v0  ;;  %1239 = vmatprep.subr.bf16.mxu0 %v5218_v1  ;;  %v5309_v0 = vld [vmem:[%s7225_s3 + $0x3a8] ss:$16 sps:$4 sm:$0xff]   ;;  %v5314_v1 = vld [vmem:[%s7225_s3 + $0x3c4] ss:$16 sps:$4 sm:$0xff]  }
  0x86   : > { %1503 = vmatprep.subr.bf16.mxu1 %v5221_v2  ;;  %v5317_v2 = vld [vmem:[%s7225_s3 + $0x3cc] ss:$16 sps:$4 sm:$0xff]  }
  0x88   : > { %1240 = vmatpush1.bf16.msra.mxu0 %v5216_v4  ;;  %v5312_v4 = vld [vmem:[%s7225_s3 + $0x3c0] ss:$16 sps:$4 sm:$0xff]  }
  0x89   : > { %1504 = vmatpush1.bf16.msra.mxu1 %v5219_v5  ;;  %1241 = vmatprep.subr.bf16.mxu0 %v5224_v6  ;;  %v5315_v5 = vld [vmem:[%s7225_s3 + $0x3c8] ss:$16 sps:$4 sm:$0xff]   ;;  %v5320_v6 = vld [vmem:[%s7225_s3 + $0x3e4] ss:$16 sps:$4 sm:$0xff]  }
  0x8a   : > { %1505 = vmatprep.subr.bf16.mxu1 %v5227_v7  ;;  %v5323_v7 = vld [vmem:[%s7225_s3 + $0x3ec] ss:$16 sps:$4 sm:$0xff]  }
  0x8c   : > { %1242 = vmatpush1.bf16.msra.mxu0 %v5222_v9  ;;  %v5318_v9 = vld [vmem:[%s7225_s3 + $0x3e0] ss:$16 sps:$4 sm:$0xff]  }
  0x8d   : > { %1506 = vmatpush1.bf16.msra.mxu1 %v5225_v10  ;;  %v5321_v10 = vld [vmem:[%s7225_s3 + $0x3e8] ss:$16 sps:$4 sm:$0xff]  }
  0x8e   : > { %2130 = vmatprep.subr.bf16.mxu1 %v5233_v12 }
  0x8f   : > { %1244 = vmatmul.mubr.bf16.vlgmr.msra.gmra.mrb[16].mxu0 %v5956_v3 }
  0x90   : > { %1508 = vmatmul.mubr.bf16.vlgmr.msra.gmra.mrb[16].mxu1 %v5956_v3  ;;  %1253 = vmatprep.mubr.bf16.mxu0 %v5971_v8  ;;  %v5228_v3 = vld [vmem:[%s7225_s3 + $0x200] ss:$16 sps:$4 sm:$0xff]  }
  0x91   : > { %1517 = vmatprep.mubr.bf16.mxu1 %v5971_v8  ;;  %v5230_v8 = vld [vmem:[%s7225_s3 + $0x204] ss:$16 sps:$4 sm:$0xff]   ;;  %2131 = vmatpush1.bf16.msra.mxu1 %v5231_v11  ;;  %v973_v11 = vlaneseq }
  0x92   : > { %2069 = vmatprep.subr.bf16.mxu0 %v5230_v8  ;;  %2132 = vmatprep.subr.bf16.mxu1 %v5239_v14  ;;  %v5329_v8 = vld [vmem:[%s7225_s3 + $0xc] ss:$16 sps:$4 sm:$0xff]   ;;  %v393_v14 = vld [vmem:[%s7224_s2] sm:$0x3] }
  0x93   : > { %2070 = vmatpush1.bf16.msra.mxu0 %v5228_v3  ;;  %v5326_v3 = vld [vmem:[%s7225_s3 + $0x4] ss:$16 sps:$4 sm:$0xff]   ;;  %v6389_v12 = vshrl.u32 %v973_v11, 7 }
  0x95   : > { %2133 = vmatpush1.bf16.msra.mxu1 %v5237_v16 }
  0x97   : > { %1254 = vmatmul.mubr.bf16.gmra.mrb[20].mxu0 %v5990_v13 }
  0x98   : > { %1518 = vmatmul.mubr.bf16.gmra.mrb[20].mxu1 %v5990_v13  ;;  %1263 = vmatprep.mubr.bf16.mxu0 %v6005_v18  ;;  %v5236_v13 = vld [vmem:[%s7225_s3 + $0x224] ss:$16 sps:$4 sm:$0xff]  }
  0x99   : > { %1527 = vmatprep.mubr.bf16.mxu1 %v6005_v18  ;;  %2071 = vmatprep.subr.bf16.mxu0 %v5236_v13  ;;  %v5245_v18 = vld [vmem:[%s7225_s3 + $0x24c] ss:$16 sps:$4 sm:$0xff]   ;;  %v975_v13 = vsub.s32 0, %v6389_v12 }
  0x9a   : > { %2072 = vmatpush1.bf16.msra.mxu0 %v5234_v15  ;;  %2134 = vmatprep.subr.bf16.mxu1 %v5245_v18  ;;  %v979_v15 = vsub.s32 1, %v6389_v12 }
  0x9b   : > { %2073 = vmatprep.subr.bf16.mxu0 %v5242_v17  ;;  %2135 = vmatpush1.bf16.msra.mxu1 %v5243_v20  ;;  %v6398_v16 = vrot.slane %v393_v14, %v975_v13 }
  0x9c   : > { %2136 = vmatprep.subr.bf16.mxu1 %v5251_v22 }
  0x9e   : > { %2074 = vmatpush1.bf16.msra.mxu0 %v5240_v19  ;;  %v6402_v19 = vrot.slane %v393_v14, %v979_v15 }
  0x9f   : > { %1264 = vmatmul.mubr.bf16.gmra.mrb[24].mxu0 %v6030_v25  ;;  %2075 = vmatprep.subr.bf16.mxu0 %v5248_v21 }
  0xa0   : > { %1528 = vmatmul.mubr.bf16.gmra.mrb[24].mxu1 %v6030_v25  ;;  %1273 = vmatprep.mubr.bf16.mxu0 %v6039_v29  ;;  %v5254_v25 = vld [vmem:[%s7225_s3 + $0x284] ss:$16 sps:$4 sm:$0xff]  }
  0xa1   : > { %1537 = vmatprep.mubr.bf16.mxu1 %v6039_v29  ;;  %v5260_v29 = vld [vmem:[%s7225_s3 + $0x2a4] ss:$16 sps:$4 sm:$0xff]   ;;  %2137 = vmatpush1.bf16.msra.mxu1 %v5249_v24 }
  0xa2   : > { %2076 = vmatpush1.bf16.msra.mxu0 %v5246_v23  ;;  %2138 = vmatprep.subr.bf16.mxu1 %v5257_v27 }
  0xa3   : > { %2077 = vmatprep.subr.bf16.mxu0 %v5254_v25 }
  0xa5   : > { %2139 = vmatpush1.bf16.msra.mxu1 %v5255_v28 }
  0xa6   : > { %2078 = vmatpush1.bf16.msra.mxu0 %v5252_v26  ;;  %2140 = vmatprep.subr.bf16.mxu1 %v5263_v30 }
  0xa7   : > { %1274 = vmatmul.mubr.bf16.gmra.mrb[28].mxu0 %v6060_v35  ;;  %2079 = vmatprep.subr.bf16.mxu0 %v5260_v29 }
  0xa8   : > { %1538 = vmatmul.mubr.bf16.gmra.mrb[28].mxu1 %v6060_v35  ;;  %v5264_v35 = vld [vmem:[%s7225_s3 + $0x2c0] ss:$16 sps:$4 sm:$0xff]  }
  0xa9   : > { %2141 = vmatpush1.bf16.msra.mxu1 %v5261_v32 }
  0xaa   : > { %2080 = vmatpush1.bf16.msra.mxu0 %v5258_v31  ;;  %2142 = vmatprep.subr.bf16.mxu1 %v5269_v34 }
  0xab   : > { %2081 = vmatprep.subr.bf16.mxu0 %v5266_v33 }
  0xad   : > { %2143 = vmatpush1.bf16.msra.mxu1 %v5267_v36 }
  0xae   : > { %2082 = vmatpush1.bf16.msra.mxu0 %v5264_v35  ;;  %2144 = vmatprep.subr.bf16.mxu1 %v5275_v38 }
  0xaf   : > { %2083 = vmatprep.subr.bf16.mxu0 %v5272_v37 }
  0xb1   : > { %2145 = vmatpush1.bf16.msra.mxu1 %v5273_v40 }
  0xb2   : > { %2084 = vmatpush1.bf16.msra.mxu0 %v5270_v39  ;;  %2146 = vmatprep.subr.bf16.mxu1 %v5281_v42 }
  0xb3   : > { %2085 = vmatprep.subr.bf16.mxu0 %v5278_v41 }
  0xb5   : > { %2147 = vmatpush1.bf16.msra.mxu1 %v5279_v44 }
  0xb6   : > { %2086 = vmatpush1.bf16.msra.mxu0 %v5276_v43  ;;  %2148 = vmatprep.subr.bf16.mxu1 %v5287_v46 }
  0xb7   : > { %2087 = vmatprep.subr.bf16.mxu0 %v5284_v45 }
  0xb9   : > { %2149 = vmatpush1.bf16.msra.mxu1 %v5285_v48 }
  0xba   : > { %2088 = vmatpush1.bf16.msra.mxu0 %v5282_v47  ;;  %2150 = vmatprep.subr.bf16.mxu1 %v5293_v50 }
  0xbb   : > { %2089 = vmatprep.subr.bf16.mxu0 %v5290_v49 }
  0xbd   : > { %2151 = vmatpush1.bf16.msra.mxu1 %v5291_v52 }
  0xbe   : > { %2090 = vmatpush1.bf16.msra.mxu0 %v5288_v51  ;;  %2152 = vmatprep.subr.bf16.mxu1 %v5299_v54 }
  0xbf   : > { %2091 = vmatprep.subr.bf16.mxu0 %v5296_v53 }
  0xc1   : > { %2153 = vmatpush1.bf16.msra.mxu1 %v5297_v56 }
  0xc2   : > { %2092 = vmatpush1.bf16.msra.mxu0 %v5294_v55  ;;  %2154 = vmatprep.subr.bf16.mxu1 %v5305_v58 }
  0xc3   : > { %2093 = vmatprep.subr.bf16.mxu0 %v5302_v57 }
  0xc5   : > { %2155 = vmatpush1.bf16.msra.mxu1 %v5303_v60 }
  0xc6   : > { %2094 = vmatpush1.bf16.msra.mxu0 %v5300_v59  ;;  %2156 = vmatprep.subr.bf16.mxu1 %v5311_v62 }
  0xc7   : > { %2095 = vmatprep.subr.bf16.mxu0 %v5308_v61 }
  0xc9   : > { %2157 = vmatpush1.bf16.msra.mxu1 %v5309_v0 }
  0xca   : > { %2096 = vmatpush1.bf16.msra.mxu0 %v5306_v63  ;;  %2158 = vmatprep.subr.bf16.mxu1 %v5317_v2 }
  0xcb   : > { %2097 = vmatprep.subr.bf16.mxu0 %v5314_v1 }
  0xcd   : > { %2159 = vmatpush1.bf16.msra.mxu1 %v5315_v5 }
  0xce   : > { %2098 = vmatpush1.bf16.msra.mxu0 %v5312_v4  ;;  %2160 = vmatprep.subr.bf16.mxu1 %v5323_v7 }
  0xcf   : > { %2099 = vmatprep.subr.bf16.mxu0 %v5320_v6 }
  0xd1   : > { %2161 = vmatpush1.bf16.msra.mxu1 %v5321_v10 }
  0xd2   : > { %2100 = vmatpush1.bf16.msra.mxu0 %v5318_v9  ;;  %2572 = vmatprep.subr.bf16.mxu1 %v5329_v8 }
  0xd3   : > { %2511 = vmatprep.subr.bf16.mxu0 %v5326_v3 }
 0x122   : > { %v657_v17 = vpop.f32.mrb[0].mxu0 }
 0x123   : > { %v921_v18 = vpop.f32.mrb[0].mxu1  ;;  %v659_v21 = vpop.f32.mrb[1].mxu0 }
 0x124   : > { %v958_v20 = vmax.f32 %v657_v17, %v921_v18  ;;  %v923_v22 = vpop.f32.mrb[1].mxu1  ;;  %v661_v24 = vpop.f32.mrb[2].mxu0 }
 0x125   : > { %v959_v23 = vmax.f32 %v659_v21, %v923_v22  ;;  %v925_v25 = vpop.f32.mrb[2].mxu1  ;;  %v663_v28 = vpop.f32.mrb[3].mxu0 }
 0x126   : > { %v983_v26 = vadd.f32 %v6398_v16, %v958_v20  ;;  %v960_v27 = vmax.f32 %v661_v24, %v925_v25  ;;  %v927_v29 = vpop.f32.mrb[3].mxu1 }
 0x127   : > { %v984_v30 = vadd.f32 %v6402_v19, %v959_v23  ;;  %v961_v31 = vmax.f32 %v663_v28, %v927_v29 }
 0x128   : > { %v985_v32 = vadd.f32 %v6398_v16, %v960_v27 }
 0x129   : > { %v997_v33 = vmax.f32 %v983_v26, %v984_v30  ;;  %v986_v34 = vadd.f32 %v6402_v19, %v961_v31 }
 0x12a   : > { %v667_v36 = vpop.f32.mrb[4].mxu0 }
 0x12b   : > { %v998_v35 = vmax.f32 %v985_v32, %v986_v34  ;;  %v931_v37 = vpop.f32.mrb[4].mxu1  ;;  %v669_v39 = vpop.f32.mrb[5].mxu0  ;;  %v1004_v41 = vmax.f32 %v997_v33, 0.0 }
 0x12c   : > { %v962_v38 = vmax.f32 %v667_v36, %v931_v37  ;;  %v933_v40 = vpop.f32.mrb[5].mxu1  ;;  %v671_v44 = vpop.f32.mrb[6].mxu0 }
 0x12d   : > { %v1005_v42 = vmax.f32 %v998_v35, 0.0  ;;  %v963_v43 = vmax.f32 %v669_v39, %v933_v40  ;;  %v935_v45 = vpop.f32.mrb[6].mxu1  ;;  %v673_v48 = vpop.f32.mrb[7].mxu0 }
 0x12e   : > { %v987_v46 = vadd.f32 %v6398_v16, %v962_v38  ;;  %v964_v47 = vmax.f32 %v671_v44, %v935_v45  ;;  %v937_v49 = vpop.f32.mrb[7].mxu1 }
 0x12f   : > { %v6409_v50 = vpack.c.bf16 %v1005_v42, %v1004_v41  ;;  %v988_v51 = vadd.f32 %v6402_v19, %v963_v43  ;;  %v965_v52 = vmax.f32 %v673_v48, %v937_v49 }
 0x130   : > { %v989_v53 = vadd.f32 %v6398_v16, %v964_v47 }
 0x131   : > { %v999_v54 = vmax.f32 %v987_v46, %v988_v51  ;;  %v990_v55 = vadd.f32 %v6402_v19, %v965_v52 }
 0x132   : > { %v677_v58 = vpop.f32.mrb[8].mxu0 }
 0x133   : > { %v1006_v56 = vmax.f32 %v999_v54, 0.0  ;;  %v1000_v57 = vmax.f32 %v989_v53, %v990_v55  ;;  %v941_v59 = vpop.f32.mrb[8].mxu1  ;;  %v679_v61 = vpop.f32.mrb[9].mxu0 }
 0x134   : > { %v966_v60 = vmax.f32 %v677_v58, %v941_v59  ;;  %v943_v62 = vpop.f32.mrb[9].mxu1  ;;  %v681_v2 = vpop.f32.mrb[10].mxu0 }
 0x135   : > { %v6414_v63 = vpack.c.bf16 %v1006_v56, %v1005_v42  ;;  %v1007_v0 = vmax.f32 %v1000_v57, 0.0  ;;  %v967_v1 = vmax.f32 %v679_v61, %v943_v62  ;;  %v945_v4 = vpop.f32.mrb[10].mxu1  ;;  %v683_v7 = vpop.f32.mrb[11].mxu0 }
 0x136   : > { %v991_v5 = vadd.f32 %v6398_v16, %v966_v60  ;;  %v968_v6 = vmax.f32 %v681_v2, %v945_v4  ;;  %v947_v9 = vpop.f32.mrb[11].mxu1 }
 0x137   : > { %v6417_v10 = vpack.c.bf16 %v1007_v0, %v1006_v56  ;;  %v992_v3 = vadd.f32 %v6402_v19, %v967_v1  ;;  %v969_v8 = vmax.f32 %v683_v7, %v947_v9 }
 0x138   : > { %v993_v11 = vadd.f32 %v6398_v16, %v968_v6 }
 0x139   : > { %v1001_v14 = vmax.f32 %v991_v5, %v992_v3  ;;  %v994_v17 = vadd.f32 %v6402_v19, %v969_v8 }
 0x13a   : > { %v687_v21 = vpop.f32.mrb[12].mxu0 }
 0x13b   : > { %v6422_v18 = vmax.f32 %v1001_v14, 0.0  ;;  %v1002_v20 = vmax.f32 %v993_v11, %v994_v17  ;;  %v951_v22 = vpop.f32.mrb[12].mxu1  ;;  %v689_v24 = vpop.f32.mrb[13].mxu0 }
 0x13c   : > { %v970_v23 = vmax.f32 %v687_v21, %v951_v22  ;;  %v953_v25 = vpop.f32.mrb[13].mxu1  ;;  %v691_v28 = vpop.f32.mrb[14].mxu0 }
 0x13d   : > { %v6424_v26 = vmax.f32 %v1002_v20, 0.0  ;;  %v971_v27 = vmax.f32 %v689_v24, %v953_v25  ;;  %v955_v29 = vpop.f32.mrb[14].mxu1  ;;  %v6427_v30 = vpack.c.bf16 %v6422_v18, %v1007_v0  ;;  %v692_v32 = vpop.f32.mrb[15].mxu0  ;;  %v5324_v28 = vld [vmem:[%s7225_s3] ss:$16 sps:$4 sm:$0xff]  }
 0x13e   : > { %v6430_v31 = vadd.f32 %v6398_v16, %v970_v23  ;;  %v956_v33 = vpop.f32.mrb[15].mxu1 }
 0x13f   : > { %v6433_v34 = vadd.f32 %v6402_v19, %v971_v27  ;;  %v6437_v35 = vpack.c.bf16 %v6424_v26, %v6422_v18 }
 0x141   : > { %v1003_v36 = vmax.f32 %v6430_v31, %v6433_v34  ;;  %v5518_v31 = vld [vmem:[%s7227_s5 + $0x8] sm:$0xff]  }
 0x142   : > { %v5519_v34 = vld [vmem:[%s7227_s5 + $0x48] sm:$0xff]  }
 0x162   : > { %v1245_v37 = vpop.f32.mrb[16].mxu0 }
 0x163   : > { %v1509_v38 = vpop.f32.mrb[16].mxu1  ;;  %v1247_v40 = vpop.f32.mrb[17].mxu0 }
 0x164   : > { %v1546_v39 = vmax.f32 %v1245_v37, %v1509_v38  ;;  %v1511_v41 = vpop.f32.mrb[17].mxu1  ;;  %v1249_v43 = vpop.f32.mrb[18].mxu0  ;;  %v5327_v37 = vld [vmem:[%s7225_s3 + $0x8] ss:$16 sps:$4 sm:$0xff]  }
 0x165   : > { %v1547_v42 = vmax.f32 %v1247_v40, %v1511_v41  ;;  %v1513_v44 = vpop.f32.mrb[18].mxu1  ;;  %v1251_v47 = vpop.f32.mrb[19].mxu0 }
 0x166   : > { %v1560_v45 = vadd.f32 %v1546_v39, %v6398_v16  ;;  %v1548_v46 = vmax.f32 %v1249_v43, %v1513_v44  ;;  %v1515_v48 = vpop.f32.mrb[19].mxu1  ;;  %v5335_v43 = vld [vmem:[%s7225_s3 + $0x2c] ss:$16 sps:$4 sm:$0xff]  }
 0x167   : > { %v1561_v49 = vadd.f32 %v1547_v42, %v6402_v19  ;;  %v1549_v51 = vmax.f32 %v1251_v47, %v1515_v48  ;;  %v5332_v42 = vld [vmem:[%s7225_s3 + $0x24] ss:$16 sps:$4 sm:$0xff]  }
 0x168   : > { %v1562_v52 = vadd.f32 %v1548_v46, %v6398_v16 }
 0x169   : > { %v1574_v53 = vmax.f32 %v1560_v45, %v1561_v49  ;;  %v1563_v54 = vadd.f32 %v1549_v51, %v6402_v19 }
 0x16a   : > { %v1255_v56 = vpop.f32.mrb[20].mxu0 }
 0x16b   : > { %v1575_v55 = vmax.f32 %v1562_v52, %v1563_v54  ;;  %v1519_v57 = vpop.f32.mrb[20].mxu1  ;;  %v1257_v59 = vpop.f32.mrb[21].mxu0  ;;  %v1581_v61 = vmax.f32 %v1574_v53, 0.0  ;;  %v5330_v52 = vld [vmem:[%s7225_s3 + $0x20] ss:$16 sps:$4 sm:$0xff]  }
 0x16c   : > { %v1550_v58 = vmax.f32 %v1255_v56, %v1519_v57  ;;  %v1521_v60 = vpop.f32.mrb[21].mxu1  ;;  %v1259_v1 = vpop.f32.mrb[22].mxu0  ;;  %v5333_v53 = vld [vmem:[%s7225_s3 + $0x28] ss:$16 sps:$4 sm:$0xff]  }
 0x16d   : > { %v1582_v62 = vmax.f32 %v1575_v55, 0.0  ;;  %v1551_v0 = vmax.f32 %v1257_v59, %v1521_v60  ;;  %v1523_v2 = vpop.f32.mrb[22].mxu1  ;;  %v1261_v6 = vpop.f32.mrb[23].mxu0  ;;  %v5341_v55 = vld [vmem:[%s7225_s3 + $0x4c] ss:$16 sps:$4 sm:$0xff]  }
 0x16e   : > { %v1564_v4 = vadd.f32 %v1550_v58, %v6398_v16  ;;  %v1552_v5 = vmax.f32 %v1259_v1, %v1523_v2  ;;  %v1525_v7 = vpop.f32.mrb[23].mxu1  ;;  %v5336_v60 = vld [vmem:[%s7225_s3 + $0x40] ss:$16 sps:$4 sm:$0xff]  }
 0x16f   : > { %v1565_v9 = vadd.f32 %v1551_v0, %v6402_v19  ;;  %v1553_v3 = vmax.f32 %v1261_v6, %v1525_v7  ;;  %v6447_v8 = vpack.c.bf16 %v1582_v62, %v1581_v61 }
 0x170   : > { %v1566_v11 = vadd.f32 %v1552_v5, %v6398_v16 }
 0x171   : > { %v1576_v14 = vmax.f32 %v1564_v4, %v1565_v9  ;;  %v1567_v17 = vadd.f32 %v1553_v3, %v6402_v19  ;;  %v5339_v4 = vld [vmem:[%s7225_s3 + $0x48] ss:$16 sps:$4 sm:$0xff]   ;;  %v5344_v9 = vld [vmem:[%s7225_s3 + $0x64] ss:$16 sps:$4 sm:$0xff]   ;;  %v5347_v3 = vld [vmem:[%s7225_s3 + $0x6c] ss:$16 sps:$4 sm:$0xff]  }
 0x172   : > { %v1265_v22 = vpop.f32.mrb[24].mxu0 }
 0x173   : > { %v1583_v20 = vmax.f32 %v1576_v14, 0.0  ;;  %v1577_v21 = vmax.f32 %v1566_v11, %v1567_v17  ;;  %v1529_v23 = vpop.f32.mrb[24].mxu1  ;;  %v1267_v25 = vpop.f32.mrb[25].mxu0 }
 0x174   : > { %v1554_v24 = vmax.f32 %v1265_v22, %v1529_v23  ;;  %v1531_v27 = vpop.f32.mrb[25].mxu1  ;;  %v1269_v38 = vpop.f32.mrb[26].mxu0  ;;  %v5345_v23 = vld [vmem:[%s7225_s3 + $0x68] ss:$16 sps:$4 sm:$0xff]  }
 0x175   : > { %v1584_v29 = vmax.f32 %v1577_v21, 0.0  ;;  %v1555_v32 = vmax.f32 %v1267_v25, %v1531_v27  ;;  %v1679_v33 = vpack.c.bf16 %v1583_v20, %v1582_v62  ;;  %v1533_v39 = vpop.f32.mrb[26].mxu1  ;;  %v1271_v44 = vpop.f32.mrb[27].mxu0  ;;  %v5348_v25 = vld [vmem:[%s7225_s3 + $0x80] ss:$16 sps:$4 sm:$0xff]  }
 0x176   : > { %v1568_v40 = vadd.f32 %v1554_v24, %v6398_v16  ;;  %v1556_v41 = vmax.f32 %v1269_v38, %v1533_v39  ;;  %v1535_v45 = vpop.f32.mrb[27].mxu1  ;;  %v5351_v27 = vld [vmem:[%s7225_s3 + $0x88] ss:$16 sps:$4 sm:$0xff]   ;;  %v5365_v38 = vld [vmem:[%s7225_s3 + $0xcc] ss:$16 sps:$4 sm:$0xff]  }
 0x177   : > { %v6464_v46 = vpack.c.bf16 %v1584_v29, %v1583_v20  ;;  %v1569_v47 = vadd.f32 %v1555_v32, %v6402_v19  ;;  %2101 = vmatprep.mubr.bf16.mxu0 %v1679_v33  ;;  %2162 = vmatprep.mubr.bf16.mxu1 %v1679_v33  ;;  %v1557_v48 = vmax.f32 %v1271_v44, %v1535_v45  ;;  %v5359_v32 = vld [vmem:[%s7225_s3 + $0xac] ss:$16 sps:$4 sm:$0xff]   ;;  %v5354_v33 = vld [vmem:[%s7225_s3 + $0xa0] ss:$16 sps:$4 sm:$0xff]   ;;  %v5374_v44 = vld [vmem:[%s7225_s3 + $0x104] ss:$16 sps:$4 sm:$0xff]  }
 0x178   : > { %2102 = vmatmul.mubr.bf16.vlgmr.msra.gmra.mrb[32].mxu0 %v6414_v63  ;;  %2163 = vmatmul.mubr.bf16.vlgmr.msra.gmra.mrb[32].mxu1 %v6414_v63  ;;  %v1570_v49 = vadd.f32 %v1556_v41, %v6398_v16  ;;  %v5338_v63 = vld [vmem:[%s7225_s3 + $0x44] ss:$16 sps:$4 sm:$0xff]   ;;  %v5360_v39 = vld [vmem:[%s7225_s3 + $0xc0] ss:$16 sps:$4 sm:$0xff]   ;;  %v5371_v41 = vld [vmem:[%s7225_s3 + $0xec] ss:$16 sps:$4 sm:$0xff]  }
 0x179   : > { %v1578_v51 = vmax.f32 %v1568_v40, %v1569_v47  ;;  %2512 = vmatpush1.bf16.msra.mxu0 %v5324_v28  ;;  %2573 = vmatpush1.bf16.msra.mxu1 %v5327_v37  ;;  %v1571_v54 = vadd.f32 %v1557_v48, %v6402_v19  ;;  %v1682_v28 = vpack.c.bf16 %v6424_v26, %v6424_v26  ;;  %v5357_v26 = vld [vmem:[%s7225_s3 + $0xa8] ss:$16 sps:$4 sm:$0xff]   ;;  %v5362_v37 = vld [vmem:[%s7225_s3 + $0xc4] ss:$16 sps:$4 sm:$0xff]   ;;  %v5377_v45 = vld [vmem:[%s7225_s3 + $0x10c] ss:$16 sps:$4 sm:$0xff]  }
 0x17a   : > { %2513 = vmatprep.subr.bf16.mxu0 %v5332_v42  ;;  %2574 = vmatprep.subr.bf16.mxu1 %v5335_v43  ;;  %v1275_v58 = vpop.f32.mrb[28].mxu0  ;;  %v5368_v40 = vld [vmem:[%s7225_s3 + $0xe4] ss:$16 sps:$4 sm:$0xff]   ;;  %v5366_v42 = vld [vmem:[%s7225_s3 + $0xe0] ss:$16 sps:$4 sm:$0xff]  }
 0x17b   : > { %v6483_v56 = vmax.f32 %v1578_v51, 0.0  ;;  %v1579_v57 = vmax.f32 %v1570_v49, %v1571_v54  ;;  %v1539_v59 = vpop.f32.mrb[28].mxu1  ;;  %v1277_v62 = vpop.f32.mrb[29].mxu0  ;;  %v5369_v43 = vld [vmem:[%s7225_s3 + $0xe8] ss:$16 sps:$4 sm:$0xff]  }
 0x17c   : > { %v1558_v61 = vmax.f32 %v1275_v58, %v1539_v59  ;;  %v1541_v0 = vpop.f32.mrb[29].mxu1  ;;  %v1279_v6 = vpop.f32.mrb[30].mxu0  ;;  %v5372_v47 = vld [vmem:[%s7225_s3 + $0x100] ss:$16 sps:$4 sm:$0xff]   ;;  %v5375_v48 = vld [vmem:[%s7225_s3 + $0x108] ss:$16 sps:$4 sm:$0xff]  }
 0x17d   : > { %v1586_v1 = vmax.f32 %v1579_v57, 0.0  ;;  %2514 = vmatpush1.bf16.msra.mxu0 %v5330_v52  ;;  %2575 = vmatpush1.bf16.msra.mxu1 %v5333_v53  ;;  %v1681_v2 = vpack.c.bf16 %v6483_v56, %v1584_v29  ;;  %v1559_v5 = vmax.f32 %v1277_v62, %v1541_v0  ;;  %v1543_v7 = vpop.f32.mrb[30].mxu1  ;;  %v1280_v14 = vpop.f32.mrb[31].mxu0  ;;  %v5356_v29 = vld [vmem:[%s7225_s3 + $0xa4] ss:$16 sps:$4 sm:$0xff]  }
 0x17e   : > { %2515 = vmatprep.subr.bf16.mxu0 %v5338_v63  ;;  %2576 = vmatprep.subr.bf16.mxu1 %v5341_v55  ;;  %v6499_v11 = vadd.f32 %v1558_v61, %v6398_v16  ;;  %v1544_v17 = vpop.f32.mrb[31].mxu1  ;;  %v5342_v16 = vld [vmem:[%s7225_s3 + $0x60] ss:$16 sps:$4 sm:$0xff]   ;;  %v5380_v49 = vld [vmem:[%s7225_s3 + $0x124] ss:$16 sps:$4 sm:$0xff]  }
 0x17f   : > { %2111 = vmatprep.mubr.bf16.mxu0 %v1681_v2  ;;  %2172 = vmatprep.mubr.bf16.mxu1 %v1681_v2  ;;  %v1683_v20 = vpack.c.bf16 %v1586_v1, %v1586_v1  ;;  %v6502_v21 = vpack.c.bf16 %v1586_v1, %v6483_v56  ;;  %v6505_v22 = vadd.f32 %v1559_v5, %v6402_v19  ;;  %v5350_v19 = vld [vmem:[%s7225_s3 + $0x84] ss:$16 sps:$4 sm:$0xff]   ;;  %v5383_v51 = vld [vmem:[%s7225_s3 + $0x12c] ss:$16 sps:$4 sm:$0xff]   ;;  %v5378_v52 = vld [vmem:[%s7225_s3 + $0x120] ss:$16 sps:$4 sm:$0xff]  }
 0x180   : > { %2112 = vmatmul.mubr.bf16.gmra.mrb[36].mxu0 %v6427_v30  ;;  %2173 = vmatmul.mubr.bf16.gmra.mrb[36].mxu1 %v6427_v30  ;;  %v5353_v30 = vld [vmem:[%s7225_s3 + $0x8c] ss:$16 sps:$4 sm:$0xff]   ;;  %v5381_v53 = vld [vmem:[%s7225_s3 + $0x128] ss:$16 sps:$4 sm:$0xff]   ;;  %v5386_v54 = vld [vmem:[%s7225_s3 + $0x144] ss:$16 sps:$4 sm:$0xff]  }
 0x181   : > { %2516 = vmatpush1.bf16.msra.mxu0 %v5336_v60  ;;  %2577 = vmatpush1.bf16.msra.mxu1 %v5339_v4  ;;  %v1580_v24 = vmax.f32 %v6499_v11, %v6505_v22  ;;  %v5389_v63 = vld [vmem:[%s7225_s3 + $0x14c] ss:$16 sps:$4 sm:$0xff]   ;;  %v5384_v55 = vld [vmem:[%s7225_s3 + $0x140] ss:$16 sps:$4 sm:$0xff]   ;;  %v5387_v57 = vld [vmem:[%s7225_s3 + $0x148] ss:$16 sps:$4 sm:$0xff]  }
 0x182   : > { %2517 = vmatprep.subr.bf16.mxu0 %v5344_v9  ;;  %2578 = vmatprep.subr.bf16.mxu1 %v5347_v3  ;;  %v5392_v58 = vld [vmem:[%s7225_s3 + $0x164] ss:$16 sps:$4 sm:$0xff]   ;;  %v5395_v59 = vld [vmem:[%s7225_s3 + $0x16c] ss:$16 sps:$4 sm:$0xff]   ;;  %v5390_v60 = vld [vmem:[%s7225_s3 + $0x160] ss:$16 sps:$4 sm:$0xff]  }
 0x183   : > { %2121 = vmatprep.mubr.bf16.mxu0 %v1683_v20  ;;  %2182 = vmatprep.mubr.bf16.mxu1 %v1683_v20  ;;  %v5393_v61 = vld [vmem:[%s7225_s3 + $0x168] ss:$16 sps:$4 sm:$0xff]   ;;  %v5398_v62 = vld [vmem:[%s7225_s3 + $0x184] ss:$16 sps:$4 sm:$0xff]   ;;  %v5401_v0 = vld [vmem:[%s7225_s3 + $0x18c] ss:$16 sps:$4 sm:$0xff]  }
 0x184   : > { %v5396_v1 = vld [vmem:[%s7225_s3 + $0x180] ss:$16 sps:$4 sm:$0xff]   ;;  %v5399_v2 = vld [vmem:[%s7225_s3 + $0x188] ss:$16 sps:$4 sm:$0xff]   ;;  %v5404_v4 = vld [vmem:[%s7225_s3 + $0x1a4] ss:$16 sps:$4 sm:$0xff]  }
 0x185   : > { %2518 = vmatpush1.bf16.msra.mxu0 %v5342_v16  ;;  %2579 = vmatpush1.bf16.msra.mxu1 %v5345_v23  ;;  %v5407_v5 = vld [vmem:[%s7225_s3 + $0x1ac] ss:$16 sps:$4 sm:$0xff]   ;;  %v5402_v6 = vld [vmem:[%s7225_s3 + $0x1a0] ss:$16 sps:$4 sm:$0xff]   ;;  %v5405_v7 = vld [vmem:[%s7225_s3 + $0x1a8] ss:$16 sps:$4 sm:$0xff]  }
 0x186   : > { %2519 = vmatprep.subr.bf16.mxu0 %v5350_v19  ;;  %2580 = vmatprep.subr.bf16.mxu1 %v5353_v30  ;;  %v5410_v9 = vld [vmem:[%s7225_s3 + $0x1c4] ss:$16 sps:$4 sm:$0xff]   ;;  %v5413_v3 = vld [vmem:[%s7225_s3 + $0x1cc] ss:$16 sps:$4 sm:$0xff]   ;;  %v5408_v14 = vld [vmem:[%s7225_s3 + $0x1c0] ss:$16 sps:$4 sm:$0xff]  }
 0x187   : > { %v5411_v17 = vld [vmem:[%s7225_s3 + $0x1c8] ss:$16 sps:$4 sm:$0xff]   ;;  %v5416_v20 = vld [vmem:[%s7225_s3 + $0x1e4] ss:$16 sps:$4 sm:$0xff]   ;;  %v5419_v16 = vld [vmem:[%s7225_s3 + $0x1ec] ss:$16 sps:$4 sm:$0xff]  }
 0x188   : > { %2122 = vmatmul.mubr.bf16.gmra.mrb[40].mxu0 %v1682_v28  ;;  %2183 = vmatmul.mubr.bf16.gmra.mrb[40].mxu1 %v1682_v28  ;;  %v5414_v23 = vld [vmem:[%s7225_s3 + $0x1e0] ss:$16 sps:$4 sm:$0xff]   ;;  %v5417_v19 = vld [vmem:[%s7225_s3 + $0x1e8] ss:$16 sps:$4 sm:$0xff]   ;;  %v5422_v30 = vld [vmem:[%s7225_s3 + $0x404] ss:$16 sps:$4 sm:$0xff]  }
 0x189   : > { %2520 = vmatpush1.bf16.msra.mxu0 %v5348_v25  ;;  %2581 = vmatpush1.bf16.msra.mxu1 %v5351_v27  ;;  %v5425_v25 = vld [vmem:[%s7225_s3 + $0x40c] ss:$16 sps:$4 sm:$0xff]   ;;  %v5420_v27 = vld [vmem:[%s7225_s3 + $0x400] ss:$16 sps:$4 sm:$0xff]   ;;  %v5423_v28 = vld [vmem:[%s7225_s3 + $0x408] ss:$16 sps:$4 sm:$0xff]  }
 0x18a   : > { %2543 = vmatprep.mubr.bf16.mxu0 %v6447_v8  ;;  %2604 = vmatprep.mubr.bf16.mxu1 %v6447_v8  ;;  %v5363_v8 = vld [vmem:[%s7225_s3 + $0xc8] ss:$16 sps:$4 sm:$0xff]   ;;  %v5517_v11 = vld [vmem:[%s7227_s5 + $0x40] sm:$0xff]   ;;  %v5634_v22 = vmov 0.0  }
 0x18b   : > { %2521 = vmatprep.subr.bf16.mxu0 %v5356_v29  ;;  %2582 = vmatprep.subr.bf16.mxu1 %v5359_v32  ;;  %v5428_v29 = vld [vmem:[%s7225_s3 + $0x424] ss:$16 sps:$4 sm:$0xff]   ;;  %v5431_v32 = vld [vmem:[%s7225_s3 + $0x42c] ss:$16 sps:$4 sm:$0xff]  }
 0x18d   : > { %2522 = vmatpush1.bf16.msra.mxu0 %v5354_v33  ;;  %2583 = vmatpush1.bf16.msra.mxu1 %v5357_v26  ;;  %v5426_v33 = vld [vmem:[%s7225_s3 + $0x420] ss:$16 sps:$4 sm:$0xff]   ;;  %v5429_v26 = vld [vmem:[%s7225_s3 + $0x428] ss:$16 sps:$4 sm:$0xff]  }
 0x18e   : > { %2523 = vmatprep.subr.bf16.mxu0 %v5362_v37  ;;  %2584 = vmatprep.subr.bf16.mxu1 %v5365_v38  ;;  %v5437_v37 = vld [vmem:[%s7225_s3 + $0x44c] ss:$16 sps:$4 sm:$0xff]   ;;  %v5432_v38 = vld [vmem:[%s7225_s3 + $0x440] ss:$16 sps:$4 sm:$0xff]  }
 0x191   : > { %2524 = vmatpush1.bf16.msra.mxu0 %v5360_v39  ;;  %2585 = vmatpush1.bf16.msra.mxu1 %v5363_v8  ;;  %v5435_v39 = vld [vmem:[%s7225_s3 + $0x448] ss:$16 sps:$4 sm:$0xff]   ;;  %v1611_v8 = vpack.c.bf16 %v6483_v56, %v6483_v56  ;;  %v5438_v56 = vld [vmem:[%s7225_s3 + $0x460] ss:$16 sps:$4 sm:$0xff]  }
 0x192   : > { %2525 = vmatprep.subr.bf16.mxu0 %v5368_v40  ;;  %2586 = vmatprep.subr.bf16.mxu1 %v5371_v41  ;;  %v5440_v40 = vld [vmem:[%s7225_s3 + $0x464] ss:$16 sps:$4 sm:$0xff]   ;;  %v5443_v41 = vld [vmem:[%s7225_s3 + $0x46c] ss:$16 sps:$4 sm:$0xff]  }
 0x195   : > { %2526 = vmatpush1.bf16.msra.mxu0 %v5366_v42  ;;  %2587 = vmatpush1.bf16.msra.mxu1 %v5369_v43  ;;  %v5441_v42 = vld [vmem:[%s7225_s3 + $0x468] ss:$16 sps:$4 sm:$0xff]   ;;  %v5446_v43 = vld [vmem:[%s7225_s3 + $0x484] ss:$16 sps:$4 sm:$0xff]  }
 0x196   : > { %2527 = vmatprep.subr.bf16.mxu0 %v5374_v44  ;;  %2588 = vmatprep.subr.bf16.mxu1 %v5377_v45  ;;  %v5449_v44 = vld [vmem:[%s7225_s3 + $0x48c] ss:$16 sps:$4 sm:$0xff]   ;;  %v1610_v45 = vpack.c.bf16 %v6422_v18, %v6422_v18  ;;  %v5450_v18 = vld [vmem:[%s7225_s3 + $0x4a0] ss:$16 sps:$4 sm:$0xff]  }
 0x199   : > { %2528 = vmatpush1.bf16.msra.mxu0 %v5372_v47  ;;  %2589 = vmatpush1.bf16.msra.mxu1 %v5375_v48  ;;  %v5444_v47 = vld [vmem:[%s7225_s3 + $0x480] ss:$16 sps:$4 sm:$0xff]   ;;  %v5447_v48 = vld [vmem:[%s7225_s3 + $0x488] ss:$16 sps:$4 sm:$0xff]  }
 0x19a   : > { %2529 = vmatprep.subr.bf16.mxu0 %v5380_v49  ;;  %2590 = vmatprep.subr.bf16.mxu1 %v5383_v51  ;;  %v5452_v49 = vld [vmem:[%s7225_s3 + $0x4a4] ss:$16 sps:$4 sm:$0xff]   ;;  %v5455_v51 = vld [vmem:[%s7225_s3 + $0x4ac] ss:$16 sps:$4 sm:$0xff]  }
 0x19d   : > { %2530 = vmatpush1.bf16.msra.mxu0 %v5378_v52  ;;  %2591 = vmatpush1.bf16.msra.mxu1 %v5381_v53  ;;  %v5453_v52 = vld [vmem:[%s7225_s3 + $0x4a8] ss:$16 sps:$4 sm:$0xff]   ;;  %v5458_v53 = vld [vmem:[%s7225_s3 + $0x4c4] ss:$16 sps:$4 sm:$0xff]  }
 0x19e   : > { %2531 = vmatprep.subr.bf16.mxu0 %v5386_v54  ;;  %2592 = vmatprep.subr.bf16.mxu1 %v5389_v63  ;;  %v5456_v54 = vld [vmem:[%s7225_s3 + $0x4c0] ss:$16 sps:$4 sm:$0xff]   ;;  %v5459_v63 = vld [vmem:[%s7225_s3 + $0x4c8] ss:$16 sps:$4 sm:$0xff]  }
 0x1a1   : > { %2532 = vmatpush1.bf16.msra.mxu0 %v5384_v55  ;;  %2593 = vmatpush1.bf16.msra.mxu1 %v5387_v57  ;;  %v5464_v55 = vld [vmem:[%s7225_s3 + $0x4e4] ss:$16 sps:$4 sm:$0xff]   ;;  %v5467_v57 = vld [vmem:[%s7225_s3 + $0x4ec] ss:$16 sps:$4 sm:$0xff]  }
 0x1a2   : > { %2533 = vmatprep.subr.bf16.mxu0 %v5392_v58  ;;  %2594 = vmatprep.subr.bf16.mxu1 %v5395_v59  ;;  %v5462_v58 = vld [vmem:[%s7225_s3 + $0x4e0] ss:$16 sps:$4 sm:$0xff]   ;;  %v5465_v59 = vld [vmem:[%s7225_s3 + $0x4e8] ss:$16 sps:$4 sm:$0xff]  }
 0x1a5   : > { %2534 = vmatpush1.bf16.msra.mxu0 %v5390_v60  ;;  %2595 = vmatpush1.bf16.msra.mxu1 %v5393_v61  ;;  %v5470_v60 = vld [vmem:[%s7225_s3 + $0x504] ss:$16 sps:$4 sm:$0xff]   ;;  %v5473_v61 = vld [vmem:[%s7225_s3 + $0x50c] ss:$16 sps:$4 sm:$0xff]  }
 0x1a6   : > { %2535 = vmatprep.subr.bf16.mxu0 %v5398_v62  ;;  %2596 = vmatprep.subr.bf16.mxu1 %v5401_v0  ;;  %v5468_v62 = vld [vmem:[%s7225_s3 + $0x500] ss:$16 sps:$4 sm:$0xff]   ;;  %v5471_v0 = vld [vmem:[%s7225_s3 + $0x508] ss:$16 sps:$4 sm:$0xff]  }
 0x1a9   : > { %2536 = vmatpush1.bf16.msra.mxu0 %v5396_v1  ;;  %2597 = vmatpush1.bf16.msra.mxu1 %v5399_v2  ;;  %v5476_v1 = vld [vmem:[%s7225_s3 + $0x524] ss:$16 sps:$4 sm:$0xff]   ;;  %v5479_v2 = vld [vmem:[%s7225_s3 + $0x52c] ss:$16 sps:$4 sm:$0xff]  }
 0x1aa   : > { %2537 = vmatprep.subr.bf16.mxu0 %v5404_v4  ;;  %2598 = vmatprep.subr.bf16.mxu1 %v5407_v5  ;;  %v5474_v4 = vld [vmem:[%s7225_s3 + $0x520] ss:$16 sps:$4 sm:$0xff]   ;;  %v5477_v5 = vld [vmem:[%s7225_s3 + $0x528] ss:$16 sps:$4 sm:$0xff]  }
 0x1ad   : > { %2538 = vmatpush1.bf16.msra.mxu0 %v5402_v6  ;;  %2599 = vmatpush1.bf16.msra.mxu1 %v5405_v7  ;;  %v5482_v6 = vld [vmem:[%s7225_s3 + $0x544] ss:$16 sps:$4 sm:$0xff]   ;;  %v5485_v7 = vld [vmem:[%s7225_s3 + $0x54c] ss:$16 sps:$4 sm:$0xff]  }
 0x1ae   : > { %2539 = vmatprep.subr.bf16.mxu0 %v5410_v9  ;;  %2600 = vmatprep.subr.bf16.mxu1 %v5413_v3  ;;  %v5480_v9 = vld [vmem:[%s7225_s3 + $0x540] ss:$16 sps:$4 sm:$0xff]   ;;  %v5483_v3 = vld [vmem:[%s7225_s3 + $0x548] ss:$16 sps:$4 sm:$0xff]  }
 0x1b1   : > { %2540 = vmatpush1.bf16.msra.mxu0 %v5408_v14  ;;  %2601 = vmatpush1.bf16.msra.mxu1 %v5411_v17  ;;  %v5488_v14 = vld [vmem:[%s7225_s3 + $0x564] ss:$16 sps:$4 sm:$0xff]   ;;  %v5491_v17 = vld [vmem:[%s7225_s3 + $0x56c] ss:$16 sps:$4 sm:$0xff]  }
 0x1b2   : > { %2541 = vmatprep.subr.bf16.mxu0 %v5416_v20  ;;  %2602 = vmatprep.subr.bf16.mxu1 %v5419_v16  ;;  %v5486_v20 = vld [vmem:[%s7225_s3 + $0x560] ss:$16 sps:$4 sm:$0xff]   ;;  %v5489_v16 = vld [vmem:[%s7225_s3 + $0x568] ss:$16 sps:$4 sm:$0xff]  }
 0x1b5   : > { %2542 = vmatpush1.bf16.msra.mxu0 %v5414_v23  ;;  %2603 = vmatpush1.bf16.msra.mxu1 %v5417_v19  ;;  %v5494_v23 = vld [vmem:[%s7225_s3 + $0x584] ss:$16 sps:$4 sm:$0xff]   ;;  %v5497_v19 = vld [vmem:[%s7225_s3 + $0x58c] ss:$16 sps:$4 sm:$0xff]  }
 0x1b6   : > { %3034 = vmatprep.subr.bf16.mxu0 %v5422_v30  ;;  %3095 = vmatprep.subr.bf16.mxu1 %v5425_v25  ;;  %v5492_v30 = vld [vmem:[%s7225_s3 + $0x580] ss:$16 sps:$4 sm:$0xff]   ;;  %v5495_v25 = vld [vmem:[%s7225_s3 + $0x588] ss:$16 sps:$4 sm:$0xff]  }
 0x1b8   : > { %2544 = vmatmul.mubr.bf16.vlgmr.msra.gmra.mrb[32].mxu0 %v6409_v50  ;;  %2605 = vmatmul.mubr.bf16.vlgmr.msra.gmra.mrb[32].mxu1 %v6409_v50  ;;  %v5434_v50 = vld [vmem:[%s7225_s3 + $0x444] ss:$16 sps:$4 sm:$0xff]  }
 0x1b9   : > { %2553 = vmatprep.mubr.bf16.mxu0 %v6464_v46  ;;  %2614 = vmatprep.mubr.bf16.mxu1 %v6464_v46 }
 0x1ba   : > { %3035 = vmatpush1.bf16.msra.mxu0 %v5420_v27  ;;  %3096 = vmatpush1.bf16.msra.mxu1 %v5423_v28  ;;  %v5500_v27 = vld [vmem:[%s7225_s3 + $0x5a4] ss:$16 sps:$4 sm:$0xff]   ;;  %v5503_v28 = vld [vmem:[%s7225_s3 + $0x5ac] ss:$16 sps:$4 sm:$0xff]  }
 0x1bb   : > { %3036 = vmatprep.subr.bf16.mxu0 %v5428_v29  ;;  %3097 = vmatprep.subr.bf16.mxu1 %v5431_v32  ;;  %v5498_v29 = vld [vmem:[%s7225_s3 + $0x5a0] ss:$16 sps:$4 sm:$0xff]   ;;  %v5501_v32 = vld [vmem:[%s7225_s3 + $0x5a8] ss:$16 sps:$4 sm:$0xff]  }
 0x1be   : > { %3037 = vmatpush1.bf16.msra.mxu0 %v5426_v33  ;;  %3098 = vmatpush1.bf16.msra.mxu1 %v5429_v26  ;;  %v5506_v33 = vld [vmem:[%s7225_s3 + $0x5c4] ss:$16 sps:$4 sm:$0xff]   ;;  %v5509_v26 = vld [vmem:[%s7225_s3 + $0x5cc] ss:$16 sps:$4 sm:$0xff]  }
 0x1bf   : > { %3038 = vmatprep.subr.bf16.mxu0 %v5434_v50  ;;  %3099 = vmatprep.subr.bf16.mxu1 %v5437_v37  ;;  %v5504_v50 = vld [vmem:[%s7225_s3 + $0x5c0] ss:$16 sps:$4 sm:$0xff]   ;;  %v5507_v37 = vld [vmem:[%s7225_s3 + $0x5c8] ss:$16 sps:$4 sm:$0xff]  }
 0x1c0   : > { %2554 = vmatmul.mubr.bf16.gmra.mrb[36].mxu0 %v6417_v10  ;;  %2615 = vmatmul.mubr.bf16.gmra.mrb[36].mxu1 %v6417_v10 }
 0x1c1   : > { %2563 = vmatprep.mubr.bf16.mxu0 %v1611_v8  ;;  %2624 = vmatprep.mubr.bf16.mxu1 %v1611_v8  ;;  %v5510_v8 = vld [vmem:[%s7225_s3 + $0x5e0] ss:$16 sps:$4 sm:$0xff]  }
 0x1c2   : > { %3039 = vmatpush1.bf16.msra.mxu0 %v5432_v38  ;;  %3100 = vmatpush1.bf16.msra.mxu1 %v5435_v39  ;;  %v5512_v38 = vld [vmem:[%s7225_s3 + $0x5e4] ss:$16 sps:$4 sm:$0xff]   ;;  %v5515_v39 = vld [vmem:[%s7225_s3 + $0x5ec] ss:$16 sps:$4 sm:$0xff]  }
 0x1c3   : > { %3040 = vmatprep.subr.bf16.mxu0 %v5440_v40  ;;  %3101 = vmatprep.subr.bf16.mxu1 %v5443_v41  ;;  %v5513_v40 = vld [vmem:[%s7225_s3 + $0x5e8] ss:$16 sps:$4 sm:$0xff]   ;;  %v1587_v41 = vmax.f32 %v1580_v24, 0.0 }
 0x1c4   : > { %v5522_v24 = vld [vmem:[%s7227_s5 + $0x18] sm:$0xff]  }
 0x1c6   : > { %3041 = vmatpush1.bf16.msra.mxu0 %v5438_v56  ;;  %3102 = vmatpush1.bf16.msra.mxu1 %v5441_v42  ;;  %v2648_v56 = vpack.c.bf16 %v1587_v41, %v1587_v41  ;;  %v1010_v42 = vmax.f32 %v1003_v36, 0.0  ;;  %v5521_v36 = vld [vmem:[%s7227_s5 + $0x50] sm:$0xff]  }
 0x1c7   : > { %3042 = vmatprep.subr.bf16.mxu0 %v5446_v43  ;;  %3103 = vmatprep.subr.bf16.mxu1 %v5449_v44  ;;  %v5523_v43 = vld [vmem:[%s7227_s5 + $0x58] sm:$0xff]   ;;  %v5524_v44 = vld [vmem:[%s7227_s5 + $0x20] sm:$0xff]  }
 0x1c8   : > { %2564 = vmatmul.mubr.bf16.gmra.mrb[44].mxu0 %v1610_v45  ;;  %2625 = vmatmul.mubr.bf16.gmra.mrb[44].mxu1 %v1610_v45  ;;  %v5525_v45 = vld [vmem:[%s7227_s5 + $0x60] sm:$0xff]  }
 0x1c9   : > { %3066 = vmatprep.mubr.bf16.mxu0 %v6464_v46  ;;  %3127 = vmatprep.mubr.bf16.mxu1 %v6464_v46  ;;  %v5461_v46 = vld [vmem:[%s7225_s3 + $0x4cc] ss:$16 sps:$4 sm:$0xff]  }
 0x1ca   : > { %3043 = vmatpush1.bf16.msra.mxu0 %v5444_v47  ;;  %3104 = vmatpush1.bf16.msra.mxu1 %v5447_v48  ;;  %v5526_v47 = vld [vmem:[%s7227_s5 + $0x28] sm:$0xff]  }
 0x1cb   : > { %3044 = vmatprep.subr.bf16.mxu0 %v5452_v49  ;;  %3105 = vmatprep.subr.bf16.mxu1 %v5455_v51  ;;  %v5527_v48 = vld [vmem:[%s7227_s5 + $0x68] sm:$0xff]   ;;  %v5528_v49 = vld [vmem:[%s7227_s5 + $0x30] sm:$0xff]  }
 0x1cc   : > { %v5529_v51 = vld [vmem:[%s7227_s5 + $0x70] sm:$0xff]  }
 0x1ce   : > { %3045 = vmatpush1.bf16.msra.mxu0 %v5450_v18  ;;  %3106 = vmatpush1.bf16.msra.mxu1 %v5453_v52  ;;  %v5530_v18 = vld [vmem:[%s7227_s5 + $0x38] sm:$0xff]  }
 0x1cf   : > { %3046 = vmatprep.subr.bf16.mxu0 %v5458_v53  ;;  %3107 = vmatprep.subr.bf16.mxu1 %v5461_v46  ;;  %v5531_v52 = vld [vmem:[%s7227_s5 + $0x78] sm:$0xff]  }
 0x1d2   : > { %3047 = vmatpush1.bf16.msra.mxu0 %v5456_v54  ;;  %3108 = vmatpush1.bf16.msra.mxu1 %v5459_v63 }
 0x1d3   : > { %3048 = vmatprep.subr.bf16.mxu0 %v5464_v55  ;;  %3109 = vmatprep.subr.bf16.mxu1 %v5467_v57 }
 0x1d6   : > { %3049 = vmatpush1.bf16.msra.mxu0 %v5462_v58  ;;  %3110 = vmatpush1.bf16.msra.mxu1 %v5465_v59 }
 0x1d7   : > { %3050 = vmatprep.subr.bf16.mxu0 %v5470_v60  ;;  %3111 = vmatprep.subr.bf16.mxu1 %v5473_v61 }
 0x1da   : > { %3051 = vmatpush1.bf16.msra.mxu0 %v5468_v62  ;;  %3112 = vmatpush1.bf16.msra.mxu1 %v5471_v0 }
 0x1db   : > { %3052 = vmatprep.subr.bf16.mxu0 %v5476_v1  ;;  %3113 = vmatprep.subr.bf16.mxu1 %v5479_v2 }
 0x1de   : > { %3053 = vmatpush1.bf16.msra.mxu0 %v5474_v4  ;;  %3114 = vmatpush1.bf16.msra.mxu1 %v5477_v5 }
 0x1df   : > { %3054 = vmatprep.subr.bf16.mxu0 %v5482_v6  ;;  %3115 = vmatprep.subr.bf16.mxu1 %v5485_v7 }
 0x1e2   : > { %3055 = vmatpush1.bf16.msra.mxu0 %v5480_v9  ;;  %3116 = vmatpush1.bf16.msra.mxu1 %v5483_v3 }
 0x1e3   : > { %3056 = vmatprep.subr.bf16.mxu0 %v5488_v14  ;;  %3117 = vmatprep.subr.bf16.mxu1 %v5491_v17  ;;  %v3187_v14 = vsub.s32 2, %v6389_v12  ;;  %v1595_v17 = vld [vmem:[%s7226_s4] sm:$0xf] }
 0x1e6   : > { %3057 = vmatpush1.bf16.msra.mxu0 %v5486_v20  ;;  %3118 = vmatpush1.bf16.msra.mxu1 %v5489_v16  ;;  %v3191_v20 = vsub.s32 3, %v6389_v12  ;;  %v6966_v16 = vrot.slane %v1595_v17, %v975_v13 }
 0x1e7   : > { %3058 = vmatprep.subr.bf16.mxu0 %v5494_v23  ;;  %3119 = vmatprep.subr.bf16.mxu1 %v5497_v19  ;;  %v6968_v23 = vrot.slane %v1595_v17, %v3187_v14  ;;  %v6972_v19 = vrot.slane %v1595_v17, %v979_v15 }
 0x1ea   : > { %3059 = vmatpush1.bf16.msra.mxu0 %v5492_v30  ;;  %3120 = vmatpush1.bf16.msra.mxu1 %v5495_v25  ;;  %v6974_v30 = vrot.slane %v1595_v17, %v3191_v20 }
 0x1eb   : > { %3060 = vmatprep.subr.bf16.mxu0 %v5500_v27  ;;  %3121 = vmatprep.subr.bf16.mxu1 %v5503_v28 }
 0x1ee   : > { %3061 = vmatpush1.bf16.msra.mxu0 %v5498_v29  ;;  %3122 = vmatpush1.bf16.msra.mxu1 %v5501_v32 }
 0x1ef   : > { %3062 = vmatprep.subr.bf16.mxu0 %v5506_v33  ;;  %3123 = vmatprep.subr.bf16.mxu1 %v5509_v26 }
 0x1f2   : > { %3063 = vmatpush1.bf16.msra.mxu0 %v5504_v50  ;;  %3124 = vmatpush1.bf16.msra.mxu1 %v5507_v37 }
 0x1f3   : > { %3064 = vmatprep.subr.bf16.mxu0 %v5512_v38  ;;  %3125 = vmatprep.subr.bf16.mxu1 %v5515_v39 }
 0x1f6   : > { %3065 = vmatpush1.bf16.msra.mxu0 %v5510_v8  ;;  %3126 = vmatpush1.bf16.msra.mxu1 %v5513_v40 }
 0x1f7   : > { %4835 = vmatprep.subr.bf16.mxu1 %v5634_v22  ;;  %4815 = vmatprep.subr.bf16.mxu0 %v5634_v22 }
 0x1f9   : > { %3067 = vmatmul.mubr.bf16.vlgmr.msra.gmra.mrb[32].mxu0 %v6417_v10  ;;  %3128 = vmatmul.mubr.bf16.vlgmr.msra.gmra.mrb[32].mxu1 %v6417_v10  ;;  %v2647_v10 = vpack.c.bf16 %v1010_v42, %v1010_v42 }
 0x1fa   : > { %3076 = vmatprep.mubr.bf16.mxu0 %v6502_v21  ;;  %3137 = vmatprep.mubr.bf16.mxu1 %v6502_v21  ;;  %v5516_v21 = vld [vmem:[%s7227_s5] sm:$0xff]  }
 0x1fb   : > { %4836 = vmatpush3.bf16.msra.mxu1 %v5516_v21  ;;  %4816 = vmatpush3.bf16.msra.mxu0 %v5517_v11 }
 0x1fc   : > { %4837 = vmatprep.subr.bf16.mxu1 %v5634_v22  ;;  %4817 = vmatprep.subr.bf16.mxu0 %v5634_v22 }
 0x1ff   : > { %4838 = vmatpush3.bf16.msra.mxu1 %v5518_v31  ;;  %4818 = vmatpush3.bf16.msra.mxu0 %v5519_v34 }
 0x200   : > { %4839 = vmatprep.subr.bf16.mxu1 %v5634_v22  ;;  %4819 = vmatprep.subr.bf16.mxu0 %v5634_v22 }
 0x201   : > { %3077 = vmatmul.mubr.bf16.gmra.mrb[36].mxu0 %v6437_v35  ;;  %3138 = vmatmul.mubr.bf16.gmra.mrb[36].mxu1 %v6437_v35  ;;  %v5520_v35 = vld [vmem:[%s7227_s5 + $0x10] sm:$0xff]  }
 0x202   : > { %3086 = vmatprep.mubr.bf16.mxu0 %v2648_v56  ;;  %3147 = vmatprep.mubr.bf16.mxu1 %v2648_v56 }
 0x203   : > { %4840 = vmatpush3.bf16.msra.mxu1 %v5520_v35  ;;  %4820 = vmatpush3.bf16.msra.mxu0 %v5521_v36 }
 0x204   : > { %4841 = vmatprep.subr.bf16.mxu1 %v5634_v22  ;;  %4821 = vmatprep.subr.bf16.mxu0 %v5634_v22 }
 0x207   : > { %4842 = vmatpush3.bf16.msra.mxu1 %v5522_v24  ;;  %4822 = vmatpush3.bf16.msra.mxu0 %v5523_v43 }
 0x208   : > { %4843 = vmatprep.subr.bf16.mxu1 %v5634_v22  ;;  %4823 = vmatprep.subr.bf16.mxu0 %v5634_v22 }
 0x209   : > { %3087 = vmatmul.mubr.bf16.gmra.mrb[48].mxu0 %v2647_v10  ;;  %3148 = vmatmul.mubr.bf16.gmra.mrb[48].mxu1 %v2647_v10 }
 0x20a   : > { %4851 = vmatprep.mubr.msk.bf16.mxu1 %vm5635_vm0, %v5634_v22  ;;  %4831 = vmatprep.mubr.msk.bf16.mxu0 %vm5635_vm0, %v5634_v22 }
 0x20b   : > { %4844 = vmatpush3.bf16.msra.mxu1 %v5524_v44  ;;  %4824 = vmatpush3.bf16.msra.mxu0 %v5525_v45  ;;  %v5532_v45 = vld [vmem:[%s7227_s5 + $0xc0] sm:$0xff]  }
 0x20c   : > { %4845 = vmatprep.subr.bf16.mxu1 %v5634_v22  ;;  %4825 = vmatprep.subr.bf16.mxu0 %v5634_v22 }
 0x20f   : > { %4846 = vmatpush3.bf16.msra.mxu1 %v5526_v47  ;;  %4826 = vmatpush3.bf16.msra.mxu0 %v5527_v48 }
 0x210   : > { %4847 = vmatprep.subr.bf16.mxu1 %v5634_v22  ;;  %4827 = vmatprep.subr.bf16.mxu0 %v5634_v22 }
 0x213   : > { %4848 = vmatpush3.bf16.msra.mxu1 %v5528_v49  ;;  %4828 = vmatpush3.bf16.msra.mxu0 %v5529_v51 }
 0x214   : > { %4849 = vmatprep.subr.bf16.mxu1 %v5634_v22  ;;  %4829 = vmatprep.subr.bf16.mxu0 %v5634_v22 }
 0x217   : > { %4850 = vmatpush3.bf16.msra.mxu1 %v5530_v18  ;;  %4830 = vmatpush3.bf16.msra.mxu0 %v5531_v52 }
 0x218   : > { %4875 = vmatprep.subr.bf16.mxu1 %v5634_v22  ;;  %4855 = vmatprep.subr.bf16.mxu0 %v5634_v22 }
 0x25b   : > { %v2123_v53 = vpop.f32.mrb[40].mxu0  ;;  %v2184_v46 = vpop.f32.mrb[40].mxu1 }
 0x25c   : > { %v2125_v54 = vpop.f32.mrb[41].mxu0  ;;  %v2186_v63 = vpop.f32.mrb[41].mxu1 }
 0x25d   : > { %v2127_v55 = vpop.f32.mrb[42].mxu0  ;;  %v2188_v57 = vpop.f32.mrb[42].mxu1 }
 0x25e   : > { %v2128_v58 = vpop.f32.mrb[43].mxu0  ;;  %v2189_v59 = vpop.f32.mrb[43].mxu1  ;;  %v5533_v55 = vld [vmem:[%s7227_s5 + $0x80] sm:$0xff]  }
 0x29b   : > { %v2565_v60 = vpop.f32.mrb[44].mxu0  ;;  %v2626_v61 = vpop.f32.mrb[44].mxu1 }
 0x29c   : > { %v6951_v62 = vadd.f32 %v2565_v60, %v2123_v53  ;;  %v6953_v0 = vadd.f32 %v2626_v61, %v2184_v46  ;;  %v2567_v1 = vpop.f32.mrb[45].mxu0  ;;  %v2628_v2 = vpop.f32.mrb[45].mxu1 }
 0x29d   : > { %v6955_v4 = vadd.f32 %v2567_v1, %v2125_v54  ;;  %v6957_v5 = vadd.f32 %v2628_v2, %v2186_v63  ;;  %v2569_v6 = vpop.f32.mrb[46].mxu0  ;;  %v2630_v7 = vpop.f32.mrb[46].mxu1  ;;  %v5534_v1 = vld [vmem:[%s7227_s5 + $0xc8] sm:$0xff]  }
 0x29e   : > { %v2570_v9 = vpop.f32.mrb[47].mxu0  ;;  %v2631_v3 = vpop.f32.mrb[47].mxu1 }
 0x29f   : > { %v5535_v9 = vld [vmem:[%s7227_s5 + $0x88] sm:$0xff]  }
 0x2cc   : > { %v3068_v25 = vpop.f32.mrb[32].mxu0  ;;  %v3129_v27 = vpop.f32.mrb[32].mxu1 }
 0x2cd   : > { %v3197_v28 = vadd.f32 %v6966_v16, %v3068_v25  ;;  %v3199_v29 = vadd.f32 %v6968_v23, %v3129_v27  ;;  %v3070_v32 = vpop.f32.mrb[33].mxu0  ;;  %v3131_v33 = vpop.f32.mrb[33].mxu1 }
 0x2ce   : > { %v3198_v26 = vadd.f32 %v6972_v19, %v3070_v32  ;;  %v3200_v13 = vadd.f32 %v6974_v30, %v3131_v33  ;;  %v3072_v50 = vpop.f32.mrb[34].mxu0  ;;  %v3133_v37 = vpop.f32.mrb[34].mxu1 }
 0x2cf   : > { %v3201_v12 = vadd.f32 %v6966_v16, %v3072_v50  ;;  %v3203_v15 = vadd.f32 %v6968_v23, %v3133_v37  ;;  %v3074_v38 = vpop.f32.mrb[35].mxu0  ;;  %v3135_v39 = vpop.f32.mrb[35].mxu1 }
 0x2d0   : > { %v3217_v8 = vmax.f32 %v3197_v28, %v3198_v26  ;;  %v3222_v40 = vmax.f32 %v3199_v29, %v3200_v13  ;;  %v3202_v41 = vadd.f32 %v6972_v19, %v3074_v38  ;;  %v3204_v56 = vadd.f32 %v6974_v30, %v3135_v39  ;;  %v5536_v29 = vld [vmem:[%s7227_s5 + $0xd0] sm:$0xff]   ;;  %v5539_v38 = vld [vmem:[%s7227_s5 + $0x98] sm:$0xff]  }
 0x2d2   : > { %v3227_v42 = vmax.f32 %v3217_v8, %v3222_v40  ;;  %v3218_v10 = vmax.f32 %v3201_v12, %v3202_v41  ;;  %v3223_v21 = vmax.f32 %v3203_v15, %v3204_v56  ;;  %v5537_v12 = vld [vmem:[%s7227_s5 + $0x90] sm:$0xff]   ;;  %v5542_v8 = vld [vmem:[%s7227_s5 + $0xe8] sm:$0xff]  }
 0x2d3   : > { %v5543_v40 = vld [vmem:[%s7227_s5 + $0xa8] sm:$0xff]   ;;  %v5544_v41 = vld [vmem:[%s7227_s5 + $0xf0] sm:$0xff]  }
 0x2d4   : > { %v3232_v11 = vmax.f32 %v3227_v42, 0.0  ;;  %v3228_v31 = vmax.f32 %v3218_v10, %v3223_v21  ;;  %v3078_v34 = vpop.f32.mrb[36].mxu0  ;;  %v3139_v35 = vpop.f32.mrb[36].mxu1  ;;  %v5545_v56 = vld [vmem:[%s7227_s5 + $0xb0] sm:$0xff]   ;;  %v5546_v42 = vld [vmem:[%s7227_s5 + $0xf8] sm:$0xff]  }
 0x2d5   : > { %v3205_v36 = vadd.f32 %v6966_v16, %v3078_v34  ;;  %v3207_v24 = vadd.f32 %v6968_v23, %v3139_v35  ;;  %v3080_v43 = vpop.f32.mrb[37].mxu0  ;;  %v3141_v44 = vpop.f32.mrb[37].mxu1  ;;  %v5547_v21 = vld [vmem:[%s7227_s5 + $0xb8] sm:$0xff]   ;;  %v5548_v34 = vld [vmem:[%s7227_s5 + $0x100] sm:$0xff]  }
 0x2d6   : > { %v3237_v47 = vpack.c.bf16 %v3232_v11, %v3232_v11  ;;  %v3233_v48 = vmax.f32 %v3228_v31, 0.0  ;;  %v3206_v49 = vadd.f32 %v6972_v19, %v3080_v43  ;;  %v3208_v51 = vadd.f32 %v6974_v30, %v3141_v44  ;;  %v3082_v18 = vpop.f32.mrb[38].mxu0  ;;  %v3143_v52 = vpop.f32.mrb[38].mxu1  ;;  %v5551_v43 = vld [vmem:[%s7227_s5 + $0x118] sm:$0xff]   ;;  %v5552_v44 = vld [vmem:[%s7227_s5 + $0x120] sm:$0xff]  }
 0x2d7   : > { %v3209_v53 = vadd.f32 %v6966_v16, %v3082_v18  ;;  %v3211_v46 = vadd.f32 %v6968_v23, %v3143_v52  ;;  %v3084_v54 = vpop.f32.mrb[39].mxu0  ;;  %v3145_v63 = vpop.f32.mrb[39].mxu1  ;;  %v5556_v18 = vld [vmem:[%s7229_s7] sm:$0xff]   ;;  %v5557_v52 = vld [vmem:[%s7229_s7 + $0x8] sm:$0xff]  }
 0x2d8   : > { %v3254_v57 = vpack.c.bf16 %v3233_v48, %v3233_v48  ;;  %v3219_v58 = vmax.f32 %v3205_v36, %v3206_v49  ;;  %v3224_v59 = vmax.f32 %v3207_v24, %v3208_v51  ;;  %v3210_v60 = vadd.f32 %v6972_v19, %v3084_v54  ;;  %4852 = vmatmul.mubr.bf16.vlgmr.msra.gmra.mrb[52].mxu1 %v3237_v47  ;;  %v5549_v36 = vld [vmem:[%s7227_s5 + $0x108] sm:$0xff]   ;;  %v5550_v24 = vld [vmem:[%s7227_s5 + $0x110] sm:$0xff]   ;;  %v5555_v48 = vld [vmem:[%s7227_s5 + $0x138] sm:$0xff]  }
 0x2d9   : > { %v3212_v61 = vadd.f32 %v6974_v30, %v3145_v63  ;;  %4876 = vmatpush3.bf16.msra.mxu1 %v5532_v45  ;;  %4891 = vmatprep.mubr.msk.bf16.mxu1 %vm5635_vm0, %v5634_v22  ;;  %v5553_v45 = vld [vmem:[%s7227_s5 + $0x128] sm:$0xff]   ;;  %v5554_v47 = vld [vmem:[%s7227_s5 + $0x130] sm:$0xff]   ;;  %v5560_v54 = vld [vmem:[%s7229_s7 + $0x20] sm:$0xff]  }
 0x2da   : > { %v7003_v2 = vmax.f32 %v3219_v58, %v3224_v59  ;;  %v3220_v6 = vmax.f32 %v3209_v53, %v3210_v60  ;;  %4832 = vmatmul.mubr.bf16.vlgmr.msra.gmra.mrb[52].mxu0 %v3254_v57  ;;  %4877 = vmatprep.subr.bf16.mxu1 %v5634_v22  ;;  %v5558_v53 = vld [vmem:[%s7229_s7 + $0x10] sm:$0xff]   ;;  %v5561_v63 = vld [vmem:[%s7229_s7 + $0x28] sm:$0xff]   ;;  %v5563_v57 = vld [vmem:[%s7229_s7 + $0x38] ss:$0 sps:$4 sm:$0xff]  }
 0x2db   : > { %v3225_v7 = vmax.f32 %v3211_v46, %v3212_v61  ;;  %4856 = vmatpush3.bf16.msra.mxu0 %v5533_v55  ;;  %4871 = vmatprep.mubr.msk.bf16.mxu0 %vm5635_vm0, %v5634_v22  ;;  %v5559_v46 = vld [vmem:[%s7229_s7 + $0x18] sm:$0xff]   ;;  %v5562_v55 = vld [vmem:[%s7229_s7 + $0x30] sm:$0xff]   ;;  %v3852_v58 = vsel %vm3850_vm1, %v5563_v57, 0  ;;  %v5564_v59 = vld [vmem:[%s7231_s9] sm:$0xff]  }
 0x2dc   : > { %v3088_v3 = vpop.f32.mrb[48].mxu0  ;;  %v3149_v14 = vpop.f32.mrb[48].mxu1  ;;  %4857 = vmatprep.subr.bf16.mxu0 %v5634_v22  ;;  %v3234_v11 = vmax.f32 %v7003_v2, 0.0  ;;  %v5565_v60 = vld [vmem:[%s7231_s9 + $0x8] sm:$0xff]   ;;  %v5566_v61 = vld [vmem:[%s7231_s9 + $0x10] sm:$0xff]  }
 0x2dd   : > { %v3230_v17 = vmax.f32 %v3220_v6, %v3225_v7  ;;  %v3172_v20 = vadd.f32 %v3088_v3, %v6951_v62  ;;  %v3174_v25 = vadd.f32 %v3149_v14, %v6953_v0  ;;  %4878 = vmatpush3.bf16.msra.mxu1 %v5534_v1  ;;  %v3090_v27 = vpop.f32.mrb[49].mxu0  ;;  %v3151_v28 = vpop.f32.mrb[49].mxu1  ;;  %v5567_v1 = vld [vmem:[%s7231_s9 + $0x18] sm:$0xff]  }
 0x2de   : > { %v3173_v32 = vadd.f32 %v3090_v27, %v6955_v4  ;;  %v3175_v33 = vadd.f32 %v3151_v28, %v6957_v5  ;;  %v3092_v26 = vpop.f32.mrb[50].mxu0  ;;  %v3153_v13 = vpop.f32.mrb[50].mxu1  ;;  %4879 = vmatprep.subr.bf16.mxu1 %v5634_v22  ;;  %v5538_v5 = vld [vmem:[%s7227_s5 + $0xd8] sm:$0xff]   ;;  %v3448_v35 = vpack.c.bf16 %v3234_v11, %v3234_v11 }
 0x2df   : > { %v3213_v50 = vadd.f32 %v6966_v16, %v3172_v20  ;;  %v3215_v62 = vadd.f32 %v6968_v23, %v3174_v25  ;;  %4858 = vmatpush3.bf16.msra.mxu0 %v5535_v9  ;;  %v3093_v0 = vpop.f32.mrb[51].mxu0  ;;  %v3154_v37 = vpop.f32.mrb[51].mxu1  ;;  %v3235_v10 = vmax.f32 %v3230_v17, 0.0 }
 0x2e0   : > { %v3214_v15 = vadd.f32 %v6972_v19, %v3173_v32  ;;  %v3216_v4 = vadd.f32 %v6974_v30, %v3175_v33  ;;  %4859 = vmatprep.subr.bf16.mxu0 %v5634_v22  ;;  %v5540_v19 = vld [vmem:[%s7227_s5 + $0xe0] sm:$0xff]  }
 0x2e1   : > { %4880 = vmatpush3.bf16.msra.mxu1 %v5536_v29  ;;  %v5541_v30 = vld [vmem:[%s7227_s5 + $0xa0] sm:$0xff]   ;;  %v3555_v31 = vpack.c.bf16 %v3235_v10, %v3235_v10 }
 0x2e2   : > { %v3221_v16 = vmax.f32 %v3213_v50, %v3214_v15  ;;  %v3226_v23 = vmax.f32 %v3215_v62, %v3216_v4  ;;  %4881 = vmatprep.subr.bf16.mxu1 %v5634_v22 }
 0x2e3   : > { %4860 = vmatpush3.bf16.msra.mxu0 %v5537_v12  ;;  %v4731_v12 = vld [vmem:[%s7228_s6] ss:$0 sm:$0xff] }
 0x2e4   : > { %v7035_v39 = vmax.f32 %v3221_v16, %v3226_v23  ;;  %4861 = vmatprep.subr.bf16.mxu0 %v5634_v22 }
 0x2e5   : > { %4882 = vmatpush3.bf16.msra.mxu1 %v5538_v5 }
 0x2e6   : > { %4883 = vmatprep.subr.bf16.mxu1 %v5634_v22  ;;  %v3236_v49 = vmax.f32 %v7035_v39, 0.0 }
 0x2e7   : > { %4862 = vmatpush3.bf16.msra.mxu0 %v5539_v38 }
 0x2e8   : > { %4863 = vmatprep.subr.bf16.mxu0 %v5634_v22  ;;  %v3662_v51 = vpack.c.bf16 %v3236_v49, %v3236_v49 }
 0x2e9   : > { %4884 = vmatpush3.bf16.msra.mxu1 %v5540_v19  ;;  %v5568_v19 = vld [vmem:[%s7231_s9 + $0x20] sm:$0xff]  }
 0x2ea   : > { %4885 = vmatprep.subr.bf16.mxu1 %v5634_v22 }
 0x2eb   : > { %4864 = vmatpush3.bf16.msra.mxu0 %v5541_v30  ;;  %v5569_v30 = vld [vmem:[%s7231_s9 + $0x28] ss:$0 sps:$4 sm:$0x33]  }
 0x2ec   : > { %4865 = vmatprep.subr.bf16.mxu0 %v5634_v22 }
 0x2ed   : > { %4886 = vmatpush3.bf16.msra.mxu1 %v5542_v8  ;;  %v3953_v8 = vsel %vm3951_vm3, %v5569_v30, 0 }
 0x2ee   : > { %4887 = vmatprep.subr.bf16.mxu1 %v5634_v22 }
 0x2ef   : > { %4866 = vmatpush3.bf16.msra.mxu0 %v5543_v40  ;;  %v4732_v40 = vld [vmem:[%s7230_s8] ss:$0 sm:$0xff] }
 0x2f0   : > { %4867 = vmatprep.subr.bf16.mxu0 %v5634_v22 }
 0x2f1   : > { %4888 = vmatpush3.bf16.msra.mxu1 %v5544_v41 }
 0x2f2   : > { %4889 = vmatprep.subr.bf16.mxu1 %v5634_v22 }
 0x2f3   : > { %4868 = vmatpush3.bf16.msra.mxu0 %v5545_v56 }
 0x2f4   : > { %4869 = vmatprep.subr.bf16.mxu0 %v5634_v22 }
 0x2f5   : > { %4890 = vmatpush3.bf16.msra.mxu1 %v5546_v42 }
 0x2f6   : > { %4915 = vmatprep.subr.bf16.mxu1 %v5634_v22 }
 0x2f7   : > { %4870 = vmatpush3.bf16.msra.mxu0 %v5547_v21 }
 0x2f8   : > { %4892 = vmatmul.mubr.bf16.vlgmr.msra.gmra.mrb[56].mxu1 %v3555_v31  ;;  %4895 = vmatprep.subr.bf16.mxu0 %v5634_v22  ;;  %v4742_v31 = vld [vmem:[%s7232_s10] ss:$0 sm:$0xff] }
 0x2f9   : > { %4931 = vmatprep.mubr.msk.bf16.mxu1 %vm5635_vm0, %v5634_v22  ;;  %4916 = vmatpush3.bf16.msra.mxu1 %v5556_v18 }
 0x2fa   : > { %4872 = vmatmul.mubr.bf16.vlgmr.msra.gmra.mrb[56].mxu0 %v3448_v35  ;;  %4917 = vmatprep.subr.bf16.mxu1 %v5634_v22 }
 0x2fb   : > { %4896 = vmatpush3.bf16.msra.mxu0 %v5548_v34  ;;  %4911 = vmatprep.mubr.msk.bf16.mxu0 %vm5635_vm0, %v5634_v22 }
 0x2fc   : > { %4897 = vmatprep.subr.bf16.mxu0 %v5634_v22 }
 0x2fd   : > { %4918 = vmatpush3.bf16.msra.mxu1 %v5557_v52 }
 0x2fe   : > { %4919 = vmatprep.subr.bf16.mxu1 %v5634_v22 }
 0x2ff   : > { %4898 = vmatpush3.bf16.msra.mxu0 %v5549_v36 }
 0x300   : > { %4899 = vmatprep.subr.bf16.mxu0 %v5634_v22 }
 0x301   : > { %4920 = vmatpush3.bf16.msra.mxu1 %v5558_v53 }
 0x302   : > { %4921 = vmatprep.subr.bf16.mxu1 %v5634_v22 }
 0x303   : > { %4900 = vmatpush3.bf16.msra.mxu0 %v5550_v24 }
 0x304   : > { %4901 = vmatprep.subr.bf16.mxu0 %v5634_v22 }
 0x305   : > { %4922 = vmatpush3.bf16.msra.mxu1 %v5559_v46 }
 0x306   : > { %4923 = vmatprep.subr.bf16.mxu1 %v5634_v22 }
 0x307   : > { %4902 = vmatpush3.bf16.msra.mxu0 %v5551_v43 }
 0x308   : > { %4903 = vmatprep.subr.bf16.mxu0 %v5634_v22 }
 0x309   : > { %4924 = vmatpush3.bf16.msra.mxu1 %v5560_v54 }
 0x30a   : > { %4925 = vmatprep.subr.bf16.mxu1 %v5634_v22 }
 0x30b   : > { %4904 = vmatpush3.bf16.msra.mxu0 %v5552_v44 }
 0x30c   : > { %4905 = vmatprep.subr.bf16.mxu0 %v5634_v22 }
 0x30d   : > { %4926 = vmatpush3.bf16.msra.mxu1 %v5561_v63 }
 0x30e   : > { %4927 = vmatprep.subr.bf16.mxu1 %v5634_v22 }
 0x30f   : > { %4906 = vmatpush3.bf16.msra.mxu0 %v5553_v45 }
 0x310   : > { %4907 = vmatprep.subr.bf16.mxu0 %v5634_v22 }
 0x311   : > { %4928 = vmatpush3.bf16.msra.mxu1 %v5562_v55 }
 0x312   : > { %4929 = vmatprep.subr.bf16.mxu1 %v5634_v22 }
 0x313   : > { %4908 = vmatpush3.bf16.msra.mxu0 %v5554_v47 }
 0x314   : > { %4909 = vmatprep.subr.bf16.mxu0 %v5634_v22 }
 0x315   : > { %4930 = vmatpush3.bf16.msra.mxu1 %v3852_v58 }
 0x317   : > { %4910 = vmatpush3.bf16.msra.mxu0 %v5555_v48 }
 0x318   : > { %4935 = vmatprep.subr.bf16.mxu0 %v5634_v22 }
 0x31a   : > { %4912 = vmatmul.mubr.bf16.vlgmr.msra.gmra.mrb[60].mxu0 %v3662_v51 }
 0x31b   : > { %4947 = vmatprep.mubr.msk.bf16.mxu0 %vm5635_vm0, %v5634_v22  ;;  %4936 = vmatpush3.bf16.msra.mxu0 %v5564_v59 }
 0x31c   : > { %4937 = vmatprep.subr.bf16.mxu0 %v5634_v22 }
 0x31f   : > { %4938 = vmatpush3.bf16.msra.mxu0 %v5565_v60 }
 0x320   : > { %4939 = vmatprep.subr.bf16.mxu0 %v5634_v22 }
 0x323   : > { %4940 = vmatpush3.bf16.msra.mxu0 %v5566_v61 }
 0x324   : > { %4941 = vmatprep.subr.bf16.mxu0 %v5634_v22 }
 0x327   : > { %4942 = vmatpush3.bf16.msra.mxu0 %v5567_v1 }
 0x328   : > { %4943 = vmatprep.subr.bf16.mxu0 %v5634_v22 }
 0x32b   : > { %4944 = vmatpush3.bf16.msra.mxu0 %v5568_v19 }
 0x32c   : > { %4945 = vmatprep.subr.bf16.mxu0 %v5634_v22 }
 0x32f   : > { %4946 = vmatpush3.bf16.msra.mxu0 %v3953_v8 }
 0x3ab   : > { %v3442_v2 = vpop.f32.mrb[52].mxu1 }
 0x3ac   : > { %v4853_v6 = vpop.f32.mrb[53].mxu1 }
 0x3ad   : > { %v3354_v7 = vpop.f32.mrb[52].mxu0  ;;  %v3445_v9 = vpop.f32.mrb[54].mxu1 }
 0x3ae   : > { %v3443_v3 = vadd.f32 %v3442_v2, %v3354_v7  ;;  %v4833_v14 = vpop.f32.mrb[53].mxu0  ;;  %v4854_v17 = vpop.f32.mrb[55].mxu1 }
 0x3af   : > { %v3357_v20 = vpop.f32.mrb[54].mxu0 }
 0x3b0   : > { %v4834_v25 = vpop.f32.mrb[55].mxu0 }
 0x3cb   : > { %v3655_v27 = vpop.f32.mrb[56].mxu1 }
 0x3cc   : > { %v4893_v28 = vpop.f32.mrb[57].mxu1 }
 0x3cd   : > { %v3548_v29 = vpop.f32.mrb[56].mxu0  ;;  %v3658_v32 = vpop.f32.mrb[58].mxu1 }
 0x3ce   : > { %v3554_v33 = vadd.f32 %v3548_v29, %v3443_v3  ;;  %v4873_v26 = vpop.f32.mrb[57].mxu0  ;;  %v4894_v13 = vpop.f32.mrb[59].mxu1 }
 0x3cf   : > { %v3551_v50 = vpop.f32.mrb[58].mxu0 }
 0x3d0   : > { %v4874_v62 = vpop.f32.mrb[59].mxu0  ;;  %v3661_v0 = vadd.f32 %v3655_v27, %v3554_v33 }
 0x3ed   : > { %v3762_v37 = vpop.f32.mrb[60].mxu0 }
 0x3ee   : > { %v3768_v15 = vadd.f32 %v3762_v37, %v3661_v0  ;;  %v4913_v4 = vpop.f32.mrb[61].mxu0 }
 0x3ef   : > { %v3765_v5 = vpop.f32.mrb[62].mxu0 }
 0x3f0   : > { %v3776_v16 = vadd.f32 %v4731_v12, %v3768_v15  ;;  %v4914_v23 = vpop.f32.mrb[63].mxu0 }
 0x3f2   : > { %v3777_v38 = vmax.f32 %v3776_v16, 0.0 }
 0x3f4   : > { %v3778_v39 = vpack.c.bf16 %v3777_v38, %v3777_v38 }
 0x3f6   : > { %4932 = vmatmul.mubr.msk.bf16.vlgmr.msra.gmra.mrb[60].mxu1 %vm3846_vm2, %v3778_v39 }
 0x4c9   : > { %v3888_v41 = vpop.f32.mrb[60].mxu1 }
 0x4ca   : > { %v3889_v56 = vadd.f32 %v4732_v40, %v3888_v41  ;;  %v4933_v42 = vpop.f32.mrb[61].mxu1 }
 0x4cb   : > { %v3891_v10 = vpop.f32.mrb[62].mxu1 }
 0x4cc   : > { %v3894_v21 = vmax.f32 %v3889_v56, 0.0  ;;  %v4934_v11 = vpop.f32.mrb[63].mxu1 }
 0x4ce   : > { %v3895_v22 = vpack.c.bf16 %v3894_v21, %v3894_v21 }
 0x4d0   : > { %4948 = vmatmul.mubr.msk.bf16.vlgmr.msra.gmra.mrb[64].mxu0 %vm3947_vm4, %v3895_v22 }
 0x5a3   : > { %v3989_v34 = vpop.f32.mrb[64].mxu0 }
 0x5a4   : > { %v3990_v35 = vadd.f32 %v4742_v31, %v3989_v34  ;;  %v4949_v36 = vpop.f32.mrb[65].mxu0 }
 0x5a5   : > { %v3992_v24 = vpop.f32.mrb[66].mxu0 }
 0x5a6   : > { %3995 = vst [vmem:[%s379_s13] sm:$0xff] %v3990_v35  ;;  %v4950_v43 = vpop.f32.mrb[67].mxu0 }
 0x5a7   : > { %5583 = shalt.err (!%p5580_p3)
}
 0x5a8   : > { %s5584_s15 = scalar_lea.hbm %s7180_s12, 128  ;;  %s5588_s13 = scalar_lea.hbm %s7233_s11, 256 }
 0x5a9   : > { %p5585_p4 = scmp.ne.s32.totalorder %s7180_s12, %s5584_s15  ;;  %p5589_p9 = scmp.lt.u32.totalorder %s7180_s12, %s7233_s11 }
 0x5aa   : > { %p5590_p10 = scmp.lt.u32.totalorder %s5588_s13, %s5584_s15  ;;  %p5592_p12 = scmp.lt.u32.totalorder %s5584_s15, %s7180_s12 }
 0x5ab   : > { %p5586_p7 = pnand %p5585_p4, %p5735_p5 }
 0x5ac   : > { %p5591_p11 = por %p5590_p10, %p5589_p9 }
 0x5ad   : > { %p5587_p8 = pneg %p5586_p7 }
 0x5ae   : > { %p5593_p13 = por %p5592_p12, %p5591_p11 }
 0x5b0   : > { %p5594_p0 = pnand %p5593_p13, %p5587_p8 }
 0x5b2   : > { %5597 = shalt.err (!%p5594_p0)
}
 0x5b3   : > { %4984 = dma.vmem_to_hbm [thread:$0]  (%p5735_p5), %s7182_s25, 128, %s7180_s12, %s3997_s30  }
 0x5b4 PF: > { %p4990_p1 = scmp.ge.s32.totalorder %s5632_s20, 2  ;;  %s4022_s21 = sand.u32 1, %s5620_s17  }
 0x5b5   : > { %s4023_s26 = scalar_lea.sflag [#allocation4], %s4022_s21 }
 0x5b6   : > { %p4987_p2 = pnand %p4990_p1, %p5739_p6 }
 0x5b8   : > { %5615 = dma.done.wait (!%p4987_p2), %s4023_s26, 128  }
 0x5b9   : > { %5617 = vsyncadd (!%p4987_p2), %s4023_s26, 4294967168  ;;  %s7239_s19 = sld [smem:[#allocation6_spill]]  ;;  %s7240_s16 = sld [smem:[#allocation7_spill]] }
 0x5ba   : > { %p21_p3 = scmp.ge.s32.totalorder %s5722_s23, 4   ;;  %s7241_s17 = smov %s5624_s18 }
 0x5bb   : > { %s7244_s20 = smov %s5722_s23 }
 0x5bc   :  { %23 = sbr.rel (!%p21_p3) target bundleno = 3 (0x3), region = 108 }
 0x5bf   : > { %s7242_s18 = smov %s7239_s19  ;;  %s7243_s19 = smov %s7240_s16 }
 0x5c3   :  { %4028 = vsyncpa [#allocation4], 1 }
 0x5c4   :  { %4030 = vsyncpa [#allocation4 + $0x1], 1 }

</bundles_post_ra>
